<compile_context>
chip_gen: v6e
topology: v6e:2x2x1
jax: 0.10.0
libtpu: 0.0.40
codegen_flags: <defaults>
</compile_context>

<pallas_src>
import jax
import jax.numpy as jnp
from jax.experimental import pallas as pl
from jax.experimental.pallas import tpu as pltpu


# Rows of the packed per-layer vector block (L, 16, D).
ROW_LN1_G, ROW_LN1_B, ROW_LN2_G, ROW_LN2_B = 0, 1, 2, 3
ROW_TM_U, ROW_TM_W = 4, 5
ROW_TM_MK, ROW_TM_MV, ROW_TM_MR, ROW_TM_BO = 6, 7, 8, 9
ROW_CM_MK, ROW_CM_MR = 10, 11
ROW_LNO_G, ROW_LNO_B = 12, 13
N_VEC_ROWS = 16


def _round_up(x, m):
    return (x + m - 1) // m * m


def _layernorm(x, g, b, eps=1e-5):
    mu = jnp.mean(x, axis=-1, keepdims=True)
    var = jnp.mean(jnp.square(x - mu), axis=-1, keepdims=True)
    return (x - mu) * jax.lax.rsqrt(var + eps) * g + b


def _time_shift(x, keep):
    # torch.nn.ZeroPad2d((0, 0, 1, -1)) on (Bb, T, D): out[:, t] = x[:, t-1],
    # out[:, 0] = 0.  Per-batch-row XLU roll + a shared (T, 1) keep mask.
    rows = [pltpu.roll(x[i], shift=1, axis=0) * keep for i in range(x.shape[0])]
    return jnp.stack(rows, axis=0)


def rwkv_block_kernel(x0_ref, vec_ref,
                      tWk_ref, tWv_ref, tWr_ref, tWo_ref,
                      cWk_ref, cWv_ref, cWr_ref,
                      out_ref,
                      e1_scr, e2_scr, e2v_scr, r_scr):
    l = pl.program_id(1)
    Bb, T, D = e1_scr.shape
    n_tiles = T // 8

    # Layer 0 for this batch block: initialize the resident residual stream.
    @pl.when(l == 0)
    def _():
        out_ref[...] = x0_ref[...]

    vecs = vec_ref[0]                                     # (16, D)
    ln1_g, ln1_b = vecs[ROW_LN1_G:ROW_LN1_G + 1], vecs[ROW_LN1_B:ROW_LN1_B + 1]
    ln2_g, ln2_b = vecs[ROW_LN2_G:ROW_LN2_G + 1], vecs[ROW_LN2_B:ROW_LN2_B + 1]
    u, w = vecs[ROW_TM_U:ROW_TM_U + 1], vecs[ROW_TM_W:ROW_TM_W + 1]
    tmk = vecs[ROW_TM_MK:ROW_TM_MK + 1]
    tmv = vecs[ROW_TM_MV:ROW_TM_MV + 1]
    tmr = vecs[ROW_TM_MR:ROW_TM_MR + 1]
    tbo = vecs[ROW_TM_BO:ROW_TM_BO + 1]
    cmk, cmr = vecs[ROW_CM_MK:ROW_CM_MK + 1], vecs[ROW_CM_MR:ROW_CM_MR + 1]

    # t == 0 zero mask for the time shift, built once and reused twice.
    t_idx = jax.lax.broadcasted_iota(jnp.int32, (T, 1), 0)
    keep = (t_idx > 0).astype(jnp.float32)                # (T, 1)

    # ------------------------------ time mixing ------------------------------
    xa = _layernorm(out_ref[...], ln1_g, ln1_b)           # (Bb, T, D)
    xs = _time_shift(xa, keep)

    key_in = (xa * tmk + xs * (1.0 - tmk)).reshape(Bb * T, D).astype(jnp.bfloat16)
    val_in = (xa * tmv + xs * (1.0 - tmv)).reshape(Bb * T, D).astype(jnp.bfloat16)
    rec_in = (xa * tmr + xs * (1.0 - tmr)).reshape(Bb * T, D).astype(jnp.bfloat16)

    k = jnp.dot(key_in, tWk_ref[0],
                preferred_element_type=jnp.float32).reshape(Bb, T, D)
    v = jnp.dot(val_in, tWv_ref[0],
                preferred_element_type=jnp.float32).reshape(Bb, T, D)
    # Stage receptance in VMEM so nothing (Bb,T,D)-sized stays live across the
    # serial recurrence loop.
    r_scr[...] = jax.nn.sigmoid(
        jnp.dot(rec_in, tWr_ref[0],
                preferred_element_type=jnp.float32)).reshape(Bb, T, D)

    # All non-recurrent WKV math hoisted out of the loop (full-vreg passes).
    uk = u + k
    q = jnp.maximum(uk, w)
    e1_scr[...] = jnp.exp(-w - q)
    e2 = jnp.exp(uk - q)
    e2_scr[...] = e2
    e2v_scr[...] = e2 * v

    # Serial WKV recurrence, unrolled by one f32 sublane tile (8 steps):
    #   a_t = e1_t * a + (e2*v)_t ; b_t = e1_t * b + e2_t ; wkv_t = a_t / b_t
    def wkv_tile(it, carry):
        a, b = carry                                      # (Bb, D) each
        base = pl.multiple_of(it * 8, 8)
        e1_t = e1_scr[:, pl.ds(base, 8), :]               # (Bb, 8, D)
        e2_t = e2_scr[:, pl.ds(base, 8), :]
        e2v_t = e2v_scr[:, pl.ds(base, 8), :]
        a_rows, b_rows = [], []
        for i in range(8):
            a = e1_t[:, i, :] * a + e2v_t[:, i, :]
            b = e1_t[:, i, :] * b + e2_t[:, i, :]
            a_rows.append(a)
            b_rows.append(b)
        a_tile = jnp.stack(a_rows, axis=1)                # (Bb, 8, D)
        b_tile = jnp.stack(b_rows, axis=1)
        # wkv overwrites the already-consumed e1 rows; exact division.
        e1_scr[:, pl.ds(base, 8), :] = a_tile / b_tile
        return a, b

    zero = jnp.zeros((Bb, D), jnp.float32)
    jax.lax.fori_loop(0, n_tiles, wkv_tile, (zero, zero))

    wkv_r = (e1_scr[...] * r_scr[...]).reshape(Bb * T, D).astype(jnp.bfloat16)
    att = jnp.dot(wkv_r, tWo_ref[0], preferred_element_type=jnp.float32) + tbo
    out_ref[...] = out_ref[...] + att.reshape(Bb, T, D)

    # ----------------------------- channel mixing -----------------------------
    xc = _layernorm(out_ref[...], ln2_g, ln2_b)
    xcs = _time_shift(xc, keep)

    key_c = (xc * cmk + xcs * (1.0 - cmk)).reshape(Bb * T, D).astype(jnp.bfloat16)
    rec_c = (xc * cmr + xcs * (1.0 - cmr)).reshape(Bb * T, D).astype(jnp.bfloat16)

    kc = jnp.dot(key_c, cWk_ref[0], preferred_element_type=jnp.float32)
    kc = jnp.square(jnp.maximum(kc, 0.0))                 # square(relu(.))
    vc = jnp.dot(kc.astype(jnp.bfloat16), cWv_ref[0],
                 preferred_element_type=jnp.float32)
    rc = jax.nn.sigmoid(jnp.dot(rec_c, cWr_ref[0],
                                preferred_element_type=jnp.float32))

    out_ref[...] = out_ref[...] + (rc * vc).reshape(Bb, T, D)

    # Final model LayerNorm folded into the last layer (hoisted out of LM head).
    @pl.when(l == pl.num_programs(1) - 1)
    def _():
        out_ref[...] = _layernorm(out_ref[...],
                                  vecs[ROW_LNO_G:ROW_LNO_G + 1],
                                  vecs[ROW_LNO_B:ROW_LNO_B + 1])


def lm_head_kernel(x_ref, W_ref, bias_ref, out_ref):
    out_ref[...] = jnp.dot(x_ref[...], W_ref[...],
                           preferred_element_type=jnp.float32) + bias_ref[...]


def _pick_bb(B, T, D):
    """Largest batch block (<=4) that divides B, keeps >=2 grid entries for
    megacore when possible, and fits the activation/scratch VMEM budget."""
    budget = 40 * 1024 * 1024
    weight_bytes = 7 * 2 * D * D * 2          # double-buffered bf16 DxD weights
    for bb in (4, 2, 1):
        if B % bb:
            continue
        if bb > 1 and B // bb < 2:
            continue
        if 8 * bb * T * D * 4 + weight_bytes <= budget:
            return bb
    return 1


def _rwkv_blocks(x0, params):
    B, T, D = x0.shape
    T_pad = _round_up(T, 8)
    if T_pad != T:
        # Trailing zero rows are causal-safe for the recurrence / time shift.
        x0 = jnp.pad(x0, ((0, 0), (0, T_pad - T), (0, 0)))
    L = params["vec_pack"].shape[0]
    Bb = _pick_bb(B, T_pad, D)

    x_spec = pl.BlockSpec((Bb, T_pad, D), lambda b, l: (b, 0, 0))
    vec_spec = pl.BlockSpec((1, N_VEC_ROWS, D), lambda b, l: (l, 0, 0))
    mat_spec = pl.BlockSpec((1, D, D), lambda b, l: (l, 0, 0))

    block_bytes = (8 * Bb * T_pad * D * 4      # in/out blocks + 4 scratch bufs
                   + 7 * 2 * D * D * 2         # double-buffered bf16 weights
                   + 2 * N_VEC_ROWS * D * 4)   # packed per-layer vectors
    vmem_limit = min(max(block_bytes + (8 << 20), 32 << 20), 96 << 20)

    out = pl.pallas_call(
        rwkv_block_kernel,
        out_shape=jax.ShapeDtypeStruct((B, T_pad, D), jnp.float32),
        grid=(B // Bb, L),
        in_specs=[x_spec, vec_spec] + [mat_spec] * 7,
        out_specs=pl.BlockSpec((Bb, T_pad, D), lambda b, l: (b, 0, 0)),
        scratch_shapes=[pltpu.VMEM((Bb, T_pad, D), jnp.float32)] * 4,
        compiler_params=pltpu.CompilerParams(
            dimension_semantics=("parallel", "arbitrary"),
            vmem_limit_bytes=vmem_limit),
    )(x0, params["vec_pack"],
      params["tm_Wk"], params["tm_Wv"], params["tm_Wr"], params["tm_Wo"],
      params["cm_Wk"], params["cm_Wv"], params["cm_Wr"])
    if T_pad != T:
        out = out[:, :T, :]
    return out


def _lm_head(x, head_W, head_b):
    B, T, D = x.shape
    V = head_W.shape[1]
    R = B * T
    # Final LN was already applied in the block kernel; cast to bf16 once here.
    x2 = x.reshape(R, D).astype(jnp.bfloat16)

    TM = 512 if R >= 512 else _round_up(R, 8)
    TN = 1024 if V >= 1024 else _round_up(V, 128)
    R_pad = _round_up(R, TM)
    V_pad = _round_up(V, TN)
    if R_pad != R:
        x2 = jnp.pad(x2, ((0, R_pad - R), (0, 0)))
    W, bias = head_W, head_b
    if V_pad != V:
        W = jnp.pad(W, ((0, 0), (0, V_pad - V)))
        bias = jnp.pad(bias, ((0, 0), (0, V_pad - V)))

    tile_bytes = 2 * (TM * D * 2 + D * TN * 2 + TN * 4 + TM * TN * 4)
    vmem_limit = min(max(tile_bytes + (8 << 20), 32 << 20), 96 << 20)

    logits = pl.pallas_call(
        lm_head_kernel,
        out_shape=jax.ShapeDtypeStruct((R_pad, V_pad), jnp.float32),
        grid=(R_pad // TM, V_pad // TN),
        in_specs=[
            pl.BlockSpec((TM, D), lambda i, j: (i, 0)),
            pl.BlockSpec((D, TN), lambda i, j: (0, j)),
            pl.BlockSpec((1, TN), lambda i, j: (0, j)),
        ],
        out_specs=pl.BlockSpec((TM, TN), lambda i, j: (i, j)),
        compiler_params=pltpu.CompilerParams(
            dimension_semantics=("parallel", "parallel"),
            vmem_limit_bytes=vmem_limit),
    )(x2, W, bias)

    return logits[:R, :V].reshape(B, T, V)


@jax.jit
def rwkv_lm_head_forward(tokens, params):
    # Glue: embedding gather + ln_in (cheap, fuses in XLA).
    emb = params["embedding"][tokens].astype(jnp.float32)        # (B, T, D)
    x0 = _layernorm(emb, params["lnin_g"], params["lnin_b"])
    x = _rwkv_blocks(x0, params)              # includes the final model LN
    return _lm_head(x, params["head_W"], params["head_b"])


def init_params(key, vocab_size, dim, n_layers):
    keys = iter(jax.random.split(key, 32))
    f32, bf16 = jnp.float32, jnp.bfloat16
    L, D, V = n_layers, dim, vocab_size
    s = 1.0 / float(dim) ** 0.5

    def nrm(shape, scale, dtype=f32):
        return (jax.random.normal(next(keys), shape, f32) * scale).astype(dtype)

    def unif(shape):
        return jax.random.uniform(next(keys), shape, f32)

    ones = jnp.ones((L, D), f32)
    zeros = jnp.zeros((L, D), f32)
    vec_rows = [
        ones, zeros,            # 0,1   ln1 gamma / beta
        ones, zeros,            # 2,3   ln2 gamma / beta
        nrm((L, D), 0.5),       # 4     tm_u
        nrm((L, D), 0.5),       # 5     tm_w
        unif((L, D)),           # 6     tm_mix_k
        unif((L, D)),           # 7     tm_mix_v
        unif((L, D)),           # 8     tm_mix_r
        nrm((L, D), s),         # 9     tm ln_out (Linear) bias
        unif((L, D)),           # 10    cm_mix_k
        unif((L, D)),           # 11    cm_mix_r
        ones, zeros,            # 12,13 final model LayerNorm (replicated per layer)
    ]
    vec_pack = jnp.stack(vec_rows, axis=1)                        # (L, 14, D)
    vec_pack = jnp.pad(vec_pack,
                       ((0, 0), (0, N_VEC_ROWS - len(vec_rows)), (0, 0)))

    return dict(
        embedding=nrm((V, D), 1.0),
        lnin_g=jnp.ones((1, 1, D), f32), lnin_b=jnp.zeros((1, 1, D), f32),
        vec_pack=vec_pack,
        tm_Wk=nrm((L, D, D), s, bf16),
        tm_Wv=nrm((L, D, D), s, bf16),
        tm_Wr=nrm((L, D, D), s, bf16),
        tm_Wo=nrm((L, D, D), s, bf16),
        cm_Wk=nrm((L, D, D), s, bf16),
        cm_Wv=nrm((L, D, D), s, bf16),
        cm_Wr=nrm((L, D, D), s, bf16),
        head_W=nrm((D, V), s, bf16),
        head_b=jnp.zeros((1, V), f32),
    )


if __name__ == "__main__":
    vocab_size, dim, n_layers = 64, 32, 2
    B, T = 4, 8

    key = jax.random.PRNGKey(0)
    pkey, tkey = jax.random.split(key)
    params = init_params(pkey, vocab_size, dim, n_layers)
    tokens = jax.random.randint(tkey, (B, T), 0, vocab_size, dtype=jnp.int32)

    logits = rwkv_lm_head_forward(tokens, params)
    jax.block_until_ready(logits)

    assert logits.shape == (B, T, vocab_size), logits.shape
    assert bool(jnp.all(jnp.isfinite(logits)))
    print("KERNEL_OK")
</pallas_src>

<mosaic_0001>
module attributes {stable_mosaic.version = 11 : i64} {
  func.func @lm_head_kernel(%arg0: i32, %arg1: i32, %arg2: memref<32x32xbf16, #tpu.memory_space<vmem>>, %arg3: memref<32x128xbf16, #tpu.memory_space<vmem>>, %arg4: memref<1x128xf32, #tpu.memory_space<vmem>>, %arg5: memref<32x128xf32, #tpu.memory_space<vmem>>) attributes {dimension_semantics = [#tpu.dimension_semantics<parallel>, #tpu.dimension_semantics<parallel>], iteration_bounds = array<i64: 1, 1>, scalar_prefetch = 0 : i64, scratch_operands = 0 : i64, tpu.core_type = #tpu.core_type<tc>, window_params = [{transform_indices = @transform_0, window_bounds = array<i64: 32, 32>}, {transform_indices = @transform_1, window_bounds = array<i64: 32, 128>}, {transform_indices = @transform_2, window_bounds = array<i64: 1, 128>}, {transform_indices = @transform_3, window_bounds = array<i64: 32, 128>}]} {
    %c0 = arith.constant 0 : index
    %c0_0 = arith.constant 0 : index
    %0 = vector.load %arg2[%c0, %c0_0] : memref<32x32xbf16, #tpu.memory_space<vmem>>, vector<32x32xbf16>
    %c0_1 = arith.constant 0 : index
    %c0_2 = arith.constant 0 : index
    %1 = vector.load %arg3[%c0_1, %c0_2] : memref<32x128xbf16, #tpu.memory_space<vmem>>, vector<32x128xbf16>
    %cst = arith.constant dense<0.000000e+00> : vector<32x128xf32>
    %2 = tpu.matmul %0, %1, %cst {dimension_numbers = #tpu.dot_dimension_numbers<[1], [0], [0], [1], [0, 0, 1, 1], [], []>} : vector<32x32xbf16>, vector<32x128xbf16>, vector<32x128xf32> -> vector<32x128xf32>
    %c0_3 = arith.constant 0 : index
    %c0_4 = arith.constant 0 : index
    %3 = vector.load %arg4[%c0_3, %c0_4] : memref<1x128xf32, #tpu.memory_space<vmem>>, vector<1x128xf32>
    %4 = vector.broadcast %3 : vector<1x128xf32> to vector<32x128xf32>
    %5 = arith.addf %2, %4 : vector<32x128xf32>
    %c0_5 = arith.constant 0 : index
    %c0_6 = arith.constant 0 : index
    %6 = vector.load %arg5[%c0_5, %c0_6] : memref<32x128xf32, #tpu.memory_space<vmem>>, vector<32x128xf32>
    tpu.vector_store %arg5[%c0_5, %c0_6], %5 {strides = array<i32>} : memref<32x128xf32, #tpu.memory_space<vmem>>, vector<32x128xf32>,
    return
  }
  func.func @transform_0(%arg0: i32, %arg1: i32) -> (i32, i32) {
    %c0_i32 = arith.constant 0 : i32
    %c0_i32_0 = arith.constant 0 : i32
    return %arg0, %c0_i32 : i32, i32
  }
  func.func @transform_1(%arg0: i32, %arg1: i32) -> (i32, i32) {
    %c0_i32 = arith.constant 0 : i32
    %c0_i32_0 = arith.constant 0 : i32
    return %c0_i32, %arg1 : i32, i32
  }
  func.func @transform_2(%arg0: i32, %arg1: i32) -> (i32, i32) {
    %c0_i32 = arith.constant 0 : i32
    %c0_i32_0 = arith.constant 0 : i32
    return %c0_i32, %arg1 : i32, i32
  }
  func.func @transform_3(%arg0: i32, %arg1: i32) -> (i32, i32) {
    %c0_i32 = arith.constant 0 : i32
    return %arg0, %arg1 : i32, i32
  }
}

module attributes {stable_mosaic.version = 11 : i64} {
  func.func @rwkv_block_kernel(%arg0: i32, %arg1: i32, %arg2: memref<2x8x32xf32, #tpu.memory_space<vmem>>, %arg3: memref<1x16x32xf32, #tpu.memory_space<vmem>>, %arg4: memref<1x32x32xbf16, #tpu.memory_space<vmem>>, %arg5: memref<1x32x32xbf16, #tpu.memory_space<vmem>>, %arg6: memref<1x32x32xbf16, #tpu.memory_space<vmem>>, %arg7: memref<1x32x32xbf16, #tpu.memory_space<vmem>>, %arg8: memref<1x32x32xbf16, #tpu.memory_space<vmem>>, %arg9: memref<1x32x32xbf16, #tpu.memory_space<vmem>>, %arg10: memref<1x32x32xbf16, #tpu.memory_space<vmem>>, %arg11: memref<2x8x32xf32, #tpu.memory_space<vmem>>, %arg12: memref<2x8x32xf32, #tpu.memory_space<vmem>>, %arg13: memref<2x8x32xf32, #tpu.memory_space<vmem>>, %arg14: memref<2x8x32xf32, #tpu.memory_space<vmem>>, %arg15: memref<2x8x32xf32, #tpu.memory_space<vmem>>) attributes {dimension_semantics = [#tpu.dimension_semantics<parallel>, #tpu.dimension_semantics<arbitrary>], iteration_bounds = array<i64: 2, 2>, scalar_prefetch = 0 : i64, scratch_operands = 4 : i64, tpu.core_type = #tpu.core_type<tc>, window_params = [{transform_indices = @transform_0, window_bounds = array<i64: 2, 8, 32>}, {transform_indices = @transform_1, window_bounds = array<i64: 1, 16, 32>}, {transform_indices = @transform_2, window_bounds = array<i64: 1, 32, 32>}, {transform_indices = @transform_3, window_bounds = array<i64: 1, 32, 32>}, {transform_indices = @transform_4, window_bounds = array<i64: 1, 32, 32>}, {transform_indices = @transform_5, window_bounds = array<i64: 1, 32, 32>}, {transform_indices = @transform_6, window_bounds = array<i64: 1, 32, 32>}, {transform_indices = @transform_7, window_bounds = array<i64: 1, 32, 32>}, {transform_indices = @transform_8, window_bounds = array<i64: 1, 32, 32>}, {transform_indices = @transform_9, window_bounds = array<i64: 2, 8, 32>}]} {
    %c0_i32 = arith.constant 0 : i32
    %0 = arith.cmpi eq, %arg1, %c0_i32 : i32
    %1 = arith.extui %0 : i1 to i32
    %c0_i32_0 = arith.constant 0 : i32
    %2 = arith.cmpi ne, %1, %c0_i32_0 : i32
    scf.if %2 {
      %c0_102 = arith.constant 0 : index
      %c0_103 = arith.constant 0 : index
      %c0_104 = arith.constant 0 : index
      %355 = vector.load %arg2[%c0_102, %c0_103, %c0_104] : memref<2x8x32xf32, #tpu.memory_space<vmem>>, vector<2x8x32xf32>
      %c0_105 = arith.constant 0 : index
      %c0_106 = arith.constant 0 : index
      %c0_107 = arith.constant 0 : index
      %356 = vector.load %arg11[%c0_105, %c0_106, %c0_107] : memref<2x8x32xf32, #tpu.memory_space<vmem>>, vector<2x8x32xf32>
      tpu.vector_store %arg11[%c0_105, %c0_106, %c0_107], %355 {strides = array<i32>} : memref<2x8x32xf32, #tpu.memory_space<vmem>>, vector<2x8x32xf32>,
    } else {
    }
    %c0 = arith.constant 0 : index
    %c0_1 = arith.constant 0 : index
    %c0_2 = arith.constant 0 : index
    %3 = vector.load %arg3[%c0, %c0_1, %c0_2] : memref<1x16x32xf32, #tpu.memory_space<vmem>>, vector<1x16x32xf32>
    %4 = vector.shape_cast %3 : vector<1x16x32xf32> to vector<16x32xf32>
    %5 = vector.extract_strided_slice %4 {offsets = [0, 0], sizes = [1, 32], strides = [1, 1]} : vector<16x32xf32> to vector<1x32xf32>
    %6 = vector.extract_strided_slice %4 {offsets = [1, 0], sizes = [1, 32], strides = [1, 1]} : vector<16x32xf32> to vector<1x32xf32>
    %7 = vector.extract_strided_slice %4 {offsets = [2, 0], sizes = [1, 32], strides = [1, 1]} : vector<16x32xf32> to vector<1x32xf32>
    %8 = vector.extract_strided_slice %4 {offsets = [3, 0], sizes = [1, 32], strides = [1, 1]} : vector<16x32xf32> to vector<1x32xf32>
    %9 = vector.extract_strided_slice %4 {offsets = [4, 0], sizes = [1, 32], strides = [1, 1]} : vector<16x32xf32> to vector<1x32xf32>
    %10 = vector.extract_strided_slice %4 {offsets = [5, 0], sizes = [1, 32], strides = [1, 1]} : vector<16x32xf32> to vector<1x32xf32>
    %11 = vector.extract_strided_slice %4 {offsets = [6, 0], sizes = [1, 32], strides = [1, 1]} : vector<16x32xf32> to vector<1x32xf32>
    %12 = vector.extract_strided_slice %4 {offsets = [7, 0], sizes = [1, 32], strides = [1, 1]} : vector<16x32xf32> to vector<1x32xf32>
    %13 = vector.extract_strided_slice %4 {offsets = [8, 0], sizes = [1, 32], strides = [1, 1]} : vector<16x32xf32> to vector<1x32xf32>
    %14 = vector.extract_strided_slice %4 {offsets = [9, 0], sizes = [1, 32], strides = [1, 1]} : vector<16x32xf32> to vector<1x32xf32>
    %15 = vector.extract_strided_slice %4 {offsets = [10, 0], sizes = [1, 32], strides = [1, 1]} : vector<16x32xf32> to vector<1x32xf32>
    %16 = vector.extract_strided_slice %4 {offsets = [11, 0], sizes = [1, 32], strides = [1, 1]} : vector<16x32xf32> to vector<1x32xf32>
    %17 = tpu.iota {dimensions = array<i32: 0>} : vector<8x1xi32>
    %c0_i32_3 = arith.constant 0 : i32
    %18 = vector.broadcast %c0_i32_3 : i32 to vector<8x1xi32>
    %19 = arith.cmpi sgt, %17, %18 : vector<8x1xi32>
    %20 = arith.extui %19 : vector<8x1xi1> to vector<8x1xi32>
    %21 = arith.sitofp %20 : vector<8x1xi32> to vector<8x1xf32>
    %c0_4 = arith.constant 0 : index
    %c0_5 = arith.constant 0 : index
    %c0_6 = arith.constant 0 : index
    %22 = vector.load %arg11[%c0_4, %c0_5, %c0_6] : memref<2x8x32xf32, #tpu.memory_space<vmem>>, vector<2x8x32xf32>
    %cst = arith.constant dense<0.000000e+00> : vector<2x8xf32>
    %23 = vector.multi_reduction <add>, %22, %cst [2] : vector<2x8x32xf32> to vector<2x8xf32>
    %24 = vector.shape_cast %23 : vector<2x8xf32> to vector<2x8x1xf32>
    %cst_7 = arith.constant 3.200000e+01 : f32
    %25 = vector.broadcast %cst_7 : f32 to vector<2x8x1xf32>
    %26 = arith.divf %24, %25 : vector<2x8x1xf32>
    %27 = vector.broadcast %26 : vector<2x8x1xf32> to vector<2x8x32xf32>
    %28 = arith.subf %22, %27 : vector<2x8x32xf32>
    %29 = arith.mulf %28, %28 : vector<2x8x32xf32>
    %cst_8 = arith.constant dense<0.000000e+00> : vector<2x8xf32>
    %30 = vector.multi_reduction <add>, %29, %cst_8 [2] : vector<2x8x32xf32> to vector<2x8xf32>
    %31 = vector.shape_cast %30 : vector<2x8xf32> to vector<2x8x1xf32>
    %cst_9 = arith.constant 3.200000e+01 : f32
    %32 = vector.broadcast %cst_9 : f32 to vector<2x8x1xf32>
    %33 = arith.divf %31, %32 : vector<2x8x1xf32>
    %34 = vector.broadcast %26 : vector<2x8x1xf32> to vector<2x8x32xf32>
    %35 = arith.subf %22, %34 : vector<2x8x32xf32>
    %cst_10 = arith.constant 9.99999974E-6 : f32
    %36 = vector.broadcast %cst_10 : f32 to vector<2x8x1xf32>
    %37 = arith.addf %33, %36 : vector<2x8x1xf32>
    %38 = math.rsqrt %37 : vector<2x8x1xf32>
    %39 = vector.broadcast %38 : vector<2x8x1xf32> to vector<2x8x32xf32>
    %40 = arith.mulf %35, %39 : vector<2x8x32xf32>
    %41 = vector.shape_cast %5 : vector<1x32xf32> to vector<1x1x32xf32>
    %42 = vector.broadcast %41 : vector<1x1x32xf32> to vector<2x8x32xf32>
    %43 = arith.mulf %40, %42 : vector<2x8x32xf32>
    %44 = vector.shape_cast %6 : vector<1x32xf32> to vector<1x1x32xf32>
    %45 = vector.broadcast %44 : vector<1x1x32xf32> to vector<2x8x32xf32>
    %46 = arith.addf %43, %45 : vector<2x8x32xf32>
    %47 = vector.extract_strided_slice %46 {offsets = [0, 0, 0], sizes = [1, 8, 32], strides = [1, 1, 1]} : vector<2x8x32xf32> to vector<1x8x32xf32>
    %48 = vector.shape_cast %47 : vector<1x8x32xf32> to vector<8x32xf32>
    %c1_i32 = arith.constant 1 : i32
    %49 = tpu.dynamic_rotate %48 by %c1_i32 dim 0 : vector<8x32xf32>, i32 -> vector<8x32xf32>
    %50 = vector.broadcast %21 : vector<8x1xf32> to vector<8x32xf32>
    %51 = arith.mulf %49, %50 : vector<8x32xf32>
    %52 = vector.extract_strided_slice %46 {offsets = [1, 0, 0], sizes = [1, 8, 32], strides = [1, 1, 1]} : vector<2x8x32xf32> to vector<1x8x32xf32>
    %53 = vector.shape_cast %52 : vector<1x8x32xf32> to vector<8x32xf32>
    %c1_i32_11 = arith.constant 1 : i32
    %54 = tpu.dynamic_rotate %53 by %c1_i32_11 dim 0 : vector<8x32xf32>, i32 -> vector<8x32xf32>
    %55 = vector.broadcast %21 : vector<8x1xf32> to vector<8x32xf32>
    %56 = arith.mulf %54, %55 : vector<8x32xf32>
    %57 = vector.shape_cast %51 : vector<8x32xf32> to vector<1x8x32xf32>
    %58 = vector.shape_cast %56 : vector<8x32xf32> to vector<1x8x32xf32>
    %59 = tpu.concatenate %57, %58 in 0 : vector<1x8x32xf32>, vector<1x8x32xf32> -> vector<2x8x32xf32>
    %60 = vector.shape_cast %11 : vector<1x32xf32> to vector<1x1x32xf32>
    %61 = vector.broadcast %60 : vector<1x1x32xf32> to vector<2x8x32xf32>
    %62 = arith.mulf %46, %61 : vector<2x8x32xf32>
    %cst_12 = arith.constant 1.000000e+00 : f32
    %63 = vector.broadcast %cst_12 : f32 to vector<1x32xf32>
    %64 = arith.subf %63, %11 : vector<1x32xf32>
    %65 = vector.shape_cast %64 : vector<1x32xf32> to vector<1x1x32xf32>
    %66 = vector.broadcast %65 : vector<1x1x32xf32> to vector<2x8x32xf32>
    %67 = arith.mulf %59, %66 : vector<2x8x32xf32>
    %68 = arith.addf %62, %67 : vector<2x8x32xf32>
    %69 = vector.shape_cast %68 : vector<2x8x32xf32> to vector<16x32xf32>
    %70 = arith.truncf %69 : vector<16x32xf32> to vector<16x32xbf16>
    %71 = vector.shape_cast %12 : vector<1x32xf32> to vector<1x1x32xf32>
    %72 = vector.broadcast %71 : vector<1x1x32xf32> to vector<2x8x32xf32>
    %73 = arith.mulf %46, %72 : vector<2x8x32xf32>
    %cst_13 = arith.constant 1.000000e+00 : f32
    %74 = vector.broadcast %cst_13 : f32 to vector<1x32xf32>
    %75 = arith.subf %74, %12 : vector<1x32xf32>
    %76 = vector.shape_cast %75 : vector<1x32xf32> to vector<1x1x32xf32>
    %77 = vector.broadcast %76 : vector<1x1x32xf32> to vector<2x8x32xf32>
    %78 = arith.mulf %59, %77 : vector<2x8x32xf32>
    %79 = arith.addf %73, %78 : vector<2x8x32xf32>
    %80 = vector.shape_cast %79 : vector<2x8x32xf32> to vector<16x32xf32>
    %81 = arith.truncf %80 : vector<16x32xf32> to vector<16x32xbf16>
    %82 = vector.shape_cast %13 : vector<1x32xf32> to vector<1x1x32xf32>
    %83 = vector.broadcast %82 : vector<1x1x32xf32> to vector<2x8x32xf32>
    %84 = arith.mulf %46, %83 : vector<2x8x32xf32>
    %cst_14 = arith.constant 1.000000e+00 : f32
    %85 = vector.broadcast %cst_14 : f32 to vector<1x32xf32>
    %86 = arith.subf %85, %13 : vector<1x32xf32>
    %87 = vector.shape_cast %86 : vector<1x32xf32> to vector<1x1x32xf32>
    %88 = vector.broadcast %87 : vector<1x1x32xf32> to vector<2x8x32xf32>
    %89 = arith.mulf %59, %88 : vector<2x8x32xf32>
    %90 = arith.addf %84, %89 : vector<2x8x32xf32>
    %91 = vector.shape_cast %90 : vector<2x8x32xf32> to vector<16x32xf32>
    %92 = arith.truncf %91 : vector<16x32xf32> to vector<16x32xbf16>
    %c0_15 = arith.constant 0 : index
    %c0_16 = arith.constant 0 : index
    %c0_17 = arith.constant 0 : index
    %93 = vector.load %arg4[%c0_15, %c0_16, %c0_17] : memref<1x32x32xbf16, #tpu.memory_space<vmem>>, vector<1x32x32xbf16>
    %94 = vector.shape_cast %93 : vector<1x32x32xbf16> to vector<32x32xbf16>
    %cst_18 = arith.constant dense<0.000000e+00> : vector<16x32xf32>
    %95 = tpu.matmul %70, %94, %cst_18 {dimension_numbers = #tpu.dot_dimension_numbers<[1], [0], [0], [1], [0, 0, 1, 1], [], []>} : vector<16x32xbf16>, vector<32x32xbf16>, vector<16x32xf32> -> vector<16x32xf32>
    %96 = vector.shape_cast %95 : vector<16x32xf32> to vector<2x8x32xf32>
    %c0_19 = arith.constant 0 : index
    %c0_20 = arith.constant 0 : index
    %c0_21 = arith.constant 0 : index
    %97 = vector.load %arg5[%c0_19, %c0_20, %c0_21] : memref<1x32x32xbf16, #tpu.memory_space<vmem>>, vector<1x32x32xbf16>
    %98 = vector.shape_cast %97 : vector<1x32x32xbf16> to vector<32x32xbf16>
    %cst_22 = arith.constant dense<0.000000e+00> : vector<16x32xf32>
    %99 = tpu.matmul %81, %98, %cst_22 {dimension_numbers = #tpu.dot_dimension_numbers<[1], [0], [0], [1], [0, 0, 1, 1], [], []>} : vector<16x32xbf16>, vector<32x32xbf16>, vector<16x32xf32> -> vector<16x32xf32>
    %100 = vector.shape_cast %99 : vector<16x32xf32> to vector<2x8x32xf32>
    %c0_23 = arith.constant 0 : index
    %c0_24 = arith.constant 0 : index
    %c0_25 = arith.constant 0 : index
    %101 = vector.load %arg6[%c0_23, %c0_24, %c0_25] : memref<1x32x32xbf16, #tpu.memory_space<vmem>>, vector<1x32x32xbf16>
    %102 = vector.shape_cast %101 : vector<1x32x32xbf16> to vector<32x32xbf16>
    %cst_26 = arith.constant dense<0.000000e+00> : vector<16x32xf32>
    %103 = tpu.matmul %92, %102, %cst_26 {dimension_numbers = #tpu.dot_dimension_numbers<[1], [0], [0], [1], [0, 0, 1, 1], [], []>} : vector<16x32xbf16>, vector<32x32xbf16>, vector<16x32xf32> -> vector<16x32xf32>
    %104 = arith.negf %103 : vector<16x32xf32>
    %105 = math.exp %104 : vector<16x32xf32>
    %cst_27 = arith.constant 1.000000e+00 : f32
    %106 = vector.broadcast %cst_27 : f32 to vector<16x32xf32>
    %107 = arith.addf %106, %105 : vector<16x32xf32>
    %108 = arith.divf %106, %107 : vector<16x32xf32>
    %109 = vector.shape_cast %108 : vector<16x32xf32> to vector<2x8x32xf32>
    %c0_28 = arith.constant 0 : index
    %c0_29 = arith.constant 0 : index
    %c0_30 = arith.constant 0 : index
    %110 = vector.load %arg15[%c0_28, %c0_29, %c0_30] : memref<2x8x32xf32, #tpu.memory_space<vmem>>, vector<2x8x32xf32>
    tpu.vector_store %arg15[%c0_28, %c0_29, %c0_30], %109 {strides = array<i32>} : memref<2x8x32xf32, #tpu.memory_space<vmem>>, vector<2x8x32xf32>,
    %111 = vector.shape_cast %9 : vector<1x32xf32> to vector<1x1x32xf32>
    %112 = vector.broadcast %111 : vector<1x1x32xf32> to vector<2x8x32xf32>
    %113 = arith.addf %112, %96 : vector<2x8x32xf32>
    %114 = vector.shape_cast %10 : vector<1x32xf32> to vector<1x1x32xf32>
    %115 = vector.broadcast %114 : vector<1x1x32xf32> to vector<2x8x32xf32>
    %116 = arith.maximumf %113, %115 : vector<2x8x32xf32>
    %cst_31 = arith.constant 0.000000e+00 : f32
    %117 = vector.broadcast %cst_31 : f32 to vector<1x32xf32>
    %118 = arith.subf %117, %10 : vector<1x32xf32>
    %119 = vector.shape_cast %118 : vector<1x32xf32> to vector<1x1x32xf32>
    %120 = vector.broadcast %119 : vector<1x1x32xf32> to vector<2x8x32xf32>
    %121 = arith.subf %120, %116 : vector<2x8x32xf32>
    %122 = math.exp %121 : vector<2x8x32xf32>
    %c0_32 = arith.constant 0 : index
    %c0_33 = arith.constant 0 : index
    %c0_34 = arith.constant 0 : index
    %123 = vector.load %arg12[%c0_32, %c0_33, %c0_34] : memref<2x8x32xf32, #tpu.memory_space<vmem>>, vector<2x8x32xf32>
    tpu.vector_store %arg12[%c0_32, %c0_33, %c0_34], %122 {strides = array<i32>} : memref<2x8x32xf32, #tpu.memory_space<vmem>>, vector<2x8x32xf32>,
    %124 = arith.subf %113, %116 : vector<2x8x32xf32>
    %125 = math.exp %124 : vector<2x8x32xf32>
    %c0_35 = arith.constant 0 : index
    %c0_36 = arith.constant 0 : index
    %c0_37 = arith.constant 0 : index
    %126 = vector.load %arg13[%c0_35, %c0_36, %c0_37] : memref<2x8x32xf32, #tpu.memory_space<vmem>>, vector<2x8x32xf32>
    tpu.vector_store %arg13[%c0_35, %c0_36, %c0_37], %125 {strides = array<i32>} : memref<2x8x32xf32, #tpu.memory_space<vmem>>, vector<2x8x32xf32>,
    %127 = arith.mulf %125, %100 : vector<2x8x32xf32>
    %c0_38 = arith.constant 0 : index
    %c0_39 = arith.constant 0 : index
    %c0_40 = arith.constant 0 : index
    %128 = vector.load %arg14[%c0_38, %c0_39, %c0_40] : memref<2x8x32xf32, #tpu.memory_space<vmem>>, vector<2x8x32xf32>
    tpu.vector_store %arg14[%c0_38, %c0_39, %c0_40], %127 {strides = array<i32>} : memref<2x8x32xf32, #tpu.memory_space<vmem>>, vector<2x8x32xf32>,
    %cst_41 = arith.constant 0.000000e+00 : f32
    %129 = vector.broadcast %cst_41 : f32 to vector<2x32xf32>
    %c0_i32_42 = arith.constant 0 : i32
    %c8_i32 = arith.constant 8 : i32
    %130 = arith.muli %c0_i32_42, %c8_i32 : i32
    %131 = tpu.assume_multiple %130, 8 : i32
    %c0_43 = arith.constant 0 : index
    %132 = arith.index_cast %131 : i32 to index
    %c0_44 = arith.constant 0 : index
    %133 = vector.load %arg12[%c0_43, %132, %c0_44] : memref<2x8x32xf32, #tpu.memory_space<vmem>>, vector<2x8x32xf32>
    %c0_45 = arith.constant 0 : index
    %134 = arith.index_cast %131 : i32 to index
    %c0_46 = arith.constant 0 : index
    %135 = vector.load %arg13[%c0_45, %134, %c0_46] : memref<2x8x32xf32, #tpu.memory_space<vmem>>, vector<2x8x32xf32>
    %c0_47 = arith.constant 0 : index
    %136 = arith.index_cast %131 : i32 to index
    %c0_48 = arith.constant 0 : index
    %137 = vector.load %arg14[%c0_47, %136, %c0_48] : memref<2x8x32xf32, #tpu.memory_space<vmem>>, vector<2x8x32xf32>
    %138 = vector.extract_strided_slice %133 {offsets = [0, 0, 0], sizes = [2, 1, 32], strides = [1, 1, 1]} : vector<2x8x32xf32> to vector<2x1x32xf32>
    %139 = vector.shape_cast %138 : vector<2x1x32xf32> to vector<2x32xf32>
    %140 = arith.mulf %139, %129 : vector<2x32xf32>
    %141 = vector.extract_strided_slice %137 {offsets = [0, 0, 0], sizes = [2, 1, 32], strides = [1, 1, 1]} : vector<2x8x32xf32> to vector<2x1x32xf32>
    %142 = vector.shape_cast %141 : vector<2x1x32xf32> to vector<2x32xf32>
    %143 = arith.addf %140, %142 : vector<2x32xf32>
    %144 = vector.extract_strided_slice %133 {offsets = [0, 0, 0], sizes = [2, 1, 32], strides = [1, 1, 1]} : vector<2x8x32xf32> to vector<2x1x32xf32>
    %145 = vector.shape_cast %144 : vector<2x1x32xf32> to vector<2x32xf32>
    %146 = arith.mulf %145, %129 : vector<2x32xf32>
    %147 = vector.extract_strided_slice %135 {offsets = [0, 0, 0], sizes = [2, 1, 32], strides = [1, 1, 1]} : vector<2x8x32xf32> to vector<2x1x32xf32>
    %148 = vector.shape_cast %147 : vector<2x1x32xf32> to vector<2x32xf32>
    %149 = arith.addf %146, %148 : vector<2x32xf32>
    %150 = vector.extract_strided_slice %133 {offsets = [0, 1, 0], sizes = [2, 1, 32], strides = [1, 1, 1]} : vector<2x8x32xf32> to vector<2x1x32xf32>
    %151 = vector.shape_cast %150 : vector<2x1x32xf32> to vector<2x32xf32>
    %152 = arith.mulf %151, %143 : vector<2x32xf32>
    %153 = vector.extract_strided_slice %137 {offsets = [0, 1, 0], sizes = [2, 1, 32], strides = [1, 1, 1]} : vector<2x8x32xf32> to vector<2x1x32xf32>
    %154 = vector.shape_cast %153 : vector<2x1x32xf32> to vector<2x32xf32>
    %155 = arith.addf %152, %154 : vector<2x32xf32>
    %156 = vector.extract_strided_slice %133 {offsets = [0, 1, 0], sizes = [2, 1, 32], strides = [1, 1, 1]} : vector<2x8x32xf32> to vector<2x1x32xf32>
    %157 = vector.shape_cast %156 : vector<2x1x32xf32> to vector<2x32xf32>
    %158 = arith.mulf %157, %149 : vector<2x32xf32>
    %159 = vector.extract_strided_slice %135 {offsets = [0, 1, 0], sizes = [2, 1, 32], strides = [1, 1, 1]} : vector<2x8x32xf32> to vector<2x1x32xf32>
    %160 = vector.shape_cast %159 : vector<2x1x32xf32> to vector<2x32xf32>
    %161 = arith.addf %158, %160 : vector<2x32xf32>
    %162 = vector.extract_strided_slice %133 {offsets = [0, 2, 0], sizes = [2, 1, 32], strides = [1, 1, 1]} : vector<2x8x32xf32> to vector<2x1x32xf32>
    %163 = vector.shape_cast %162 : vector<2x1x32xf32> to vector<2x32xf32>
    %164 = arith.mulf %163, %155 : vector<2x32xf32>
    %165 = vector.extract_strided_slice %137 {offsets = [0, 2, 0], sizes = [2, 1, 32], strides = [1, 1, 1]} : vector<2x8x32xf32> to vector<2x1x32xf32>
    %166 = vector.shape_cast %165 : vector<2x1x32xf32> to vector<2x32xf32>
    %167 = arith.addf %164, %166 : vector<2x32xf32>
    %168 = vector.extract_strided_slice %133 {offsets = [0, 2, 0], sizes = [2, 1, 32], strides = [1, 1, 1]} : vector<2x8x32xf32> to vector<2x1x32xf32>
    %169 = vector.shape_cast %168 : vector<2x1x32xf32> to vector<2x32xf32>
    %170 = arith.mulf %169, %161 : vector<2x32xf32>
    %171 = vector.extract_strided_slice %135 {offsets = [0, 2, 0], sizes = [2, 1, 32], strides = [1, 1, 1]} : vector<2x8x32xf32> to vector<2x1x32xf32>
    %172 = vector.shape_cast %171 : vector<2x1x32xf32> to vector<2x32xf32>
    %173 = arith.addf %170, %172 : vector<2x32xf32>
    %174 = vector.extract_strided_slice %133 {offsets = [0, 3, 0], sizes = [2, 1, 32], strides = [1, 1, 1]} : vector<2x8x32xf32> to vector<2x1x32xf32>
    %175 = vector.shape_cast %174 : vector<2x1x32xf32> to vector<2x32xf32>
    %176 = arith.mulf %175, %167 : vector<2x32xf32>
    %177 = vector.extract_strided_slice %137 {offsets = [0, 3, 0], sizes = [2, 1, 32], strides = [1, 1, 1]} : vector<2x8x32xf32> to vector<2x1x32xf32>
    %178 = vector.shape_cast %177 : vector<2x1x32xf32> to vector<2x32xf32>
    %179 = arith.addf %176, %178 : vector<2x32xf32>
    %180 = vector.extract_strided_slice %133 {offsets = [0, 3, 0], sizes = [2, 1, 32], strides = [1, 1, 1]} : vector<2x8x32xf32> to vector<2x1x32xf32>
    %181 = vector.shape_cast %180 : vector<2x1x32xf32> to vector<2x32xf32>
    %182 = arith.mulf %181, %173 : vector<2x32xf32>
    %183 = vector.extract_strided_slice %135 {offsets = [0, 3, 0], sizes = [2, 1, 32], strides = [1, 1, 1]} : vector<2x8x32xf32> to vector<2x1x32xf32>
    %184 = vector.shape_cast %183 : vector<2x1x32xf32> to vector<2x32xf32>
    %185 = arith.addf %182, %184 : vector<2x32xf32>
    %186 = vector.extract_strided_slice %133 {offsets = [0, 4, 0], sizes = [2, 1, 32], strides = [1, 1, 1]} : vector<2x8x32xf32> to vector<2x1x32xf32>
    %187 = vector.shape_cast %186 : vector<2x1x32xf32> to vector<2x32xf32>
    %188 = arith.mulf %187, %179 : vector<2x32xf32>
    %189 = vector.extract_strided_slice %137 {offsets = [0, 4, 0], sizes = [2, 1, 32], strides = [1, 1, 1]} : vector<2x8x32xf32> to vector<2x1x32xf32>
    %190 = vector.shape_cast %189 : vector<2x1x32xf32> to vector<2x32xf32>
    %191 = arith.addf %188, %190 : vector<2x32xf32>
    %192 = vector.extract_strided_slice %133 {offsets = [0, 4, 0], sizes = [2, 1, 32], strides = [1, 1, 1]} : vector<2x8x32xf32> to vector<2x1x32xf32>
    %193 = vector.shape_cast %192 : vector<2x1x32xf32> to vector<2x32xf32>
    %194 = arith.mulf %193, %185 : vector<2x32xf32>
    %195 = vector.extract_strided_slice %135 {offsets = [0, 4, 0], sizes = [2, 1, 32], strides = [1, 1, 1]} : vector<2x8x32xf32> to vector<2x1x32xf32>
    %196 = vector.shape_cast %195 : vector<2x1x32xf32> to vector<2x32xf32>
    %197 = arith.addf %194, %196 : vector<2x32xf32>
    %198 = vector.extract_strided_slice %133 {offsets = [0, 5, 0], sizes = [2, 1, 32], strides = [1, 1, 1]} : vector<2x8x32xf32> to vector<2x1x32xf32>
    %199 = vector.shape_cast %198 : vector<2x1x32xf32> to vector<2x32xf32>
    %200 = arith.mulf %199, %191 : vector<2x32xf32>
    %201 = vector.extract_strided_slice %137 {offsets = [0, 5, 0], sizes = [2, 1, 32], strides = [1, 1, 1]} : vector<2x8x32xf32> to vector<2x1x32xf32>
    %202 = vector.shape_cast %201 : vector<2x1x32xf32> to vector<2x32xf32>
    %203 = arith.addf %200, %202 : vector<2x32xf32>
    %204 = vector.extract_strided_slice %133 {offsets = [0, 5, 0], sizes = [2, 1, 32], strides = [1, 1, 1]} : vector<2x8x32xf32> to vector<2x1x32xf32>
    %205 = vector.shape_cast %204 : vector<2x1x32xf32> to vector<2x32xf32>
    %206 = arith.mulf %205, %197 : vector<2x32xf32>
    %207 = vector.extract_strided_slice %135 {offsets = [0, 5, 0], sizes = [2, 1, 32], strides = [1, 1, 1]} : vector<2x8x32xf32> to vector<2x1x32xf32>
    %208 = vector.shape_cast %207 : vector<2x1x32xf32> to vector<2x32xf32>
    %209 = arith.addf %206, %208 : vector<2x32xf32>
    %210 = vector.extract_strided_slice %133 {offsets = [0, 6, 0], sizes = [2, 1, 32], strides = [1, 1, 1]} : vector<2x8x32xf32> to vector<2x1x32xf32>
    %211 = vector.shape_cast %210 : vector<2x1x32xf32> to vector<2x32xf32>
    %212 = arith.mulf %211, %203 : vector<2x32xf32>
    %213 = vector.extract_strided_slice %137 {offsets = [0, 6, 0], sizes = [2, 1, 32], strides = [1, 1, 1]} : vector<2x8x32xf32> to vector<2x1x32xf32>
    %214 = vector.shape_cast %213 : vector<2x1x32xf32> to vector<2x32xf32>
    %215 = arith.addf %212, %214 : vector<2x32xf32>
    %216 = vector.extract_strided_slice %133 {offsets = [0, 6, 0], sizes = [2, 1, 32], strides = [1, 1, 1]} : vector<2x8x32xf32> to vector<2x1x32xf32>
    %217 = vector.shape_cast %216 : vector<2x1x32xf32> to vector<2x32xf32>
    %218 = arith.mulf %217, %209 : vector<2x32xf32>
    %219 = vector.extract_strided_slice %135 {offsets = [0, 6, 0], sizes = [2, 1, 32], strides = [1, 1, 1]} : vector<2x8x32xf32> to vector<2x1x32xf32>
    %220 = vector.shape_cast %219 : vector<2x1x32xf32> to vector<2x32xf32>
    %221 = arith.addf %218, %220 : vector<2x32xf32>
    %222 = vector.extract_strided_slice %133 {offsets = [0, 7, 0], sizes = [2, 1, 32], strides = [1, 1, 1]} : vector<2x8x32xf32> to vector<2x1x32xf32>
    %223 = vector.shape_cast %222 : vector<2x1x32xf32> to vector<2x32xf32>
    %224 = arith.mulf %223, %215 : vector<2x32xf32>
    %225 = vector.extract_strided_slice %137 {offsets = [0, 7, 0], sizes = [2, 1, 32], strides = [1, 1, 1]} : vector<2x8x32xf32> to vector<2x1x32xf32>
    %226 = vector.shape_cast %225 : vector<2x1x32xf32> to vector<2x32xf32>
    %227 = arith.addf %224, %226 : vector<2x32xf32>
    %228 = vector.extract_strided_slice %133 {offsets = [0, 7, 0], sizes = [2, 1, 32], strides = [1, 1, 1]} : vector<2x8x32xf32> to vector<2x1x32xf32>
    %229 = vector.shape_cast %228 : vector<2x1x32xf32> to vector<2x32xf32>
    %230 = arith.mulf %229, %221 : vector<2x32xf32>
    %231 = vector.extract_strided_slice %135 {offsets = [0, 7, 0], sizes = [2, 1, 32], strides = [1, 1, 1]} : vector<2x8x32xf32> to vector<2x1x32xf32>
    %232 = vector.shape_cast %231 : vector<2x1x32xf32> to vector<2x32xf32>
    %233 = arith.addf %230, %232 : vector<2x32xf32>
    %234 = vector.shape_cast %143 : vector<2x32xf32> to vector<2x1x32xf32>
    %235 = vector.shape_cast %155 : vector<2x32xf32> to vector<2x1x32xf32>
    %236 = vector.shape_cast %167 : vector<2x32xf32> to vector<2x1x32xf32>
    %237 = vector.shape_cast %179 : vector<2x32xf32> to vector<2x1x32xf32>
    %238 = vector.shape_cast %191 : vector<2x32xf32> to vector<2x1x32xf32>
    %239 = vector.shape_cast %203 : vector<2x32xf32> to vector<2x1x32xf32>
    %240 = vector.shape_cast %215 : vector<2x32xf32> to vector<2x1x32xf32>
    %241 = vector.shape_cast %227 : vector<2x32xf32> to vector<2x1x32xf32>
    %242 = tpu.concatenate %234, %235, %236, %237, %238, %239, %240, %241 in 1 : vector<2x1x32xf32>, vector<2x1x32xf32>, vector<2x1x32xf32>, vector<2x1x32xf32>, vector<2x1x32xf32>, vector<2x1x32xf32>, vector<2x1x32xf32>, vector<2x1x32xf32> -> vector<2x8x32xf32>
    %243 = vector.shape_cast %149 : vector<2x32xf32> to vector<2x1x32xf32>
    %244 = vector.shape_cast %161 : vector<2x32xf32> to vector<2x1x32xf32>
    %245 = vector.shape_cast %173 : vector<2x32xf32> to vector<2x1x32xf32>
    %246 = vector.shape_cast %185 : vector<2x32xf32> to vector<2x1x32xf32>
    %247 = vector.shape_cast %197 : vector<2x32xf32> to vector<2x1x32xf32>
    %248 = vector.shape_cast %209 : vector<2x32xf32> to vector<2x1x32xf32>
    %249 = vector.shape_cast %221 : vector<2x32xf32> to vector<2x1x32xf32>
    %250 = vector.shape_cast %233 : vector<2x32xf32> to vector<2x1x32xf32>
    %251 = tpu.concatenate %243, %244, %245, %246, %247, %248, %249, %250 in 1 : vector<2x1x32xf32>, vector<2x1x32xf32>, vector<2x1x32xf32>, vector<2x1x32xf32>, vector<2x1x32xf32>, vector<2x1x32xf32>, vector<2x1x32xf32>, vector<2x1x32xf32> -> vector<2x8x32xf32>
    %252 = arith.divf %242, %251 : vector<2x8x32xf32>
    %c0_49 = arith.constant 0 : index
    %253 = arith.index_cast %131 : i32 to index
    %c0_50 = arith.constant 0 : index
    %254 = vector.load %arg12[%c0_49, %253, %c0_50] : memref<2x8x32xf32, #tpu.memory_space<vmem>>, vector<2x8x32xf32>
    tpu.vector_store %arg12[%c0_49, %253, %c0_50], %252 {strides = array<i32>} : memref<2x8x32xf32, #tpu.memory_space<vmem>>, vector<2x8x32xf32>,
    %c1_i32_51 = arith.constant 1 : i32
    %c0_52 = arith.constant 0 : index
    %c0_53 = arith.constant 0 : index
    %c0_54 = arith.constant 0 : index
    %255 = vector.load %arg12[%c0_52, %c0_53, %c0_54] : memref<2x8x32xf32, #tpu.memory_space<vmem>>, vector<2x8x32xf32>
    %c0_55 = arith.constant 0 : index
    %c0_56 = arith.constant 0 : index
    %c0_57 = arith.constant 0 : index
    %256 = vector.load %arg15[%c0_55, %c0_56, %c0_57] : memref<2x8x32xf32, #tpu.memory_space<vmem>>, vector<2x8x32xf32>
    %257 = arith.mulf %255, %256 : vector<2x8x32xf32>
    %258 = vector.shape_cast %257 : vector<2x8x32xf32> to vector<16x32xf32>
    %259 = arith.truncf %258 : vector<16x32xf32> to vector<16x32xbf16>
    %c0_58 = arith.constant 0 : index
    %c0_59 = arith.constant 0 : index
    %c0_60 = arith.constant 0 : index
    %260 = vector.load %arg7[%c0_58, %c0_59, %c0_60] : memref<1x32x32xbf16, #tpu.memory_space<vmem>>, vector<1x32x32xbf16>
    %261 = vector.shape_cast %260 : vector<1x32x32xbf16> to vector<32x32xbf16>
    %cst_61 = arith.constant dense<0.000000e+00> : vector<16x32xf32>
    %262 = tpu.matmul %259, %261, %cst_61 {dimension_numbers = #tpu.dot_dimension_numbers<[1], [0], [0], [1], [0, 0, 1, 1], [], []>} : vector<16x32xbf16>, vector<32x32xbf16>, vector<16x32xf32> -> vector<16x32xf32>
    %263 = vector.broadcast %14 : vector<1x32xf32> to vector<16x32xf32>
    %264 = arith.addf %262, %263 : vector<16x32xf32>
    %c0_62 = arith.constant 0 : index
    %c0_63 = arith.constant 0 : index
    %c0_64 = arith.constant 0 : index
    %265 = vector.load %arg11[%c0_62, %c0_63, %c0_64] : memref<2x8x32xf32, #tpu.memory_space<vmem>>, vector<2x8x32xf32>
    %266 = vector.shape_cast %264 : vector<16x32xf32> to vector<2x8x32xf32>
    %267 = arith.addf %265, %266 : vector<2x8x32xf32>
    %c0_65 = arith.constant 0 : index
    %c0_66 = arith.constant 0 : index
    %c0_67 = arith.constant 0 : index
    %268 = vector.load %arg11[%c0_65, %c0_66, %c0_67] : memref<2x8x32xf32, #tpu.memory_space<vmem>>, vector<2x8x32xf32>
    tpu.vector_store %arg11[%c0_65, %c0_66, %c0_67], %267 {strides = array<i32>} : memref<2x8x32xf32, #tpu.memory_space<vmem>>, vector<2x8x32xf32>,
    %c0_68 = arith.constant 0 : index
    %c0_69 = arith.constant 0 : index
    %c0_70 = arith.constant 0 : index
    %269 = vector.load %arg11[%c0_68, %c0_69, %c0_70] : memref<2x8x32xf32, #tpu.memory_space<vmem>>, vector<2x8x32xf32>
    %cst_71 = arith.constant dense<0.000000e+00> : vector<2x8xf32>
    %270 = vector.multi_reduction <add>, %269, %cst_71 [2] : vector<2x8x32xf32> to vector<2x8xf32>
    %271 = vector.shape_cast %270 : vector<2x8xf32> to vector<2x8x1xf32>
    %cst_72 = arith.constant 3.200000e+01 : f32
    %272 = vector.broadcast %cst_72 : f32 to vector<2x8x1xf32>
    %273 = arith.divf %271, %272 : vector<2x8x1xf32>
    %274 = vector.broadcast %273 : vector<2x8x1xf32> to vector<2x8x32xf32>
    %275 = arith.subf %269, %274 : vector<2x8x32xf32>
    %276 = arith.mulf %275, %275 : vector<2x8x32xf32>
    %cst_73 = arith.constant dense<0.000000e+00> : vector<2x8xf32>
    %277 = vector.multi_reduction <add>, %276, %cst_73 [2] : vector<2x8x32xf32> to vector<2x8xf32>
    %278 = vector.shape_cast %277 : vector<2x8xf32> to vector<2x8x1xf32>
    %cst_74 = arith.constant 3.200000e+01 : f32
    %279 = vector.broadcast %cst_74 : f32 to vector<2x8x1xf32>
    %280 = arith.divf %278, %279 : vector<2x8x1xf32>
    %281 = vector.broadcast %273 : vector<2x8x1xf32> to vector<2x8x32xf32>
    %282 = arith.subf %269, %281 : vector<2x8x32xf32>
    %cst_75 = arith.constant 9.99999974E-6 : f32
    %283 = vector.broadcast %cst_75 : f32 to vector<2x8x1xf32>
    %284 = arith.addf %280, %283 : vector<2x8x1xf32>
    %285 = math.rsqrt %284 : vector<2x8x1xf32>
    %286 = vector.broadcast %285 : vector<2x8x1xf32> to vector<2x8x32xf32>
    %287 = arith.mulf %282, %286 : vector<2x8x32xf32>
    %288 = vector.shape_cast %7 : vector<1x32xf32> to vector<1x1x32xf32>
    %289 = vector.broadcast %288 : vector<1x1x32xf32> to vector<2x8x32xf32>
    %290 = arith.mulf %287, %289 : vector<2x8x32xf32>
    %291 = vector.shape_cast %8 : vector<1x32xf32> to vector<1x1x32xf32>
    %292 = vector.broadcast %291 : vector<1x1x32xf32> to vector<2x8x32xf32>
    %293 = arith.addf %290, %292 : vector<2x8x32xf32>
    %294 = vector.extract_strided_slice %293 {offsets = [0, 0, 0], sizes = [1, 8, 32], strides = [1, 1, 1]} : vector<2x8x32xf32> to vector<1x8x32xf32>
    %295 = vector.shape_cast %294 : vector<1x8x32xf32> to vector<8x32xf32>
    %c1_i32_76 = arith.constant 1 : i32
    %296 = tpu.dynamic_rotate %295 by %c1_i32_76 dim 0 : vector<8x32xf32>, i32 -> vector<8x32xf32>
    %297 = vector.broadcast %21 : vector<8x1xf32> to vector<8x32xf32>
    %298 = arith.mulf %296, %297 : vector<8x32xf32>
    %299 = vector.extract_strided_slice %293 {offsets = [1, 0, 0], sizes = [1, 8, 32], strides = [1, 1, 1]} : vector<2x8x32xf32> to vector<1x8x32xf32>
    %300 = vector.shape_cast %299 : vector<1x8x32xf32> to vector<8x32xf32>
    %c1_i32_77 = arith.constant 1 : i32
    %301 = tpu.dynamic_rotate %300 by %c1_i32_77 dim 0 : vector<8x32xf32>, i32 -> vector<8x32xf32>
    %302 = vector.broadcast %21 : vector<8x1xf32> to vector<8x32xf32>
    %303 = arith.mulf %301, %302 : vector<8x32xf32>
    %304 = vector.shape_cast %298 : vector<8x32xf32> to vector<1x8x32xf32>
    %305 = vector.shape_cast %303 : vector<8x32xf32> to vector<1x8x32xf32>
    %306 = tpu.concatenate %304, %305 in 0 : vector<1x8x32xf32>, vector<1x8x32xf32> -> vector<2x8x32xf32>
    %307 = vector.shape_cast %15 : vector<1x32xf32> to vector<1x1x32xf32>
    %308 = vector.broadcast %307 : vector<1x1x32xf32> to vector<2x8x32xf32>
    %309 = arith.mulf %293, %308 : vector<2x8x32xf32>
    %cst_78 = arith.constant 1.000000e+00 : f32
    %310 = vector.broadcast %cst_78 : f32 to vector<1x32xf32>
    %311 = arith.subf %310, %15 : vector<1x32xf32>
    %312 = vector.shape_cast %311 : vector<1x32xf32> to vector<1x1x32xf32>
    %313 = vector.broadcast %312 : vector<1x1x32xf32> to vector<2x8x32xf32>
    %314 = arith.mulf %306, %313 : vector<2x8x32xf32>
    %315 = arith.addf %309, %314 : vector<2x8x32xf32>
    %316 = vector.shape_cast %315 : vector<2x8x32xf32> to vector<16x32xf32>
    %317 = arith.truncf %316 : vector<16x32xf32> to vector<16x32xbf16>
    %318 = vector.shape_cast %16 : vector<1x32xf32> to vector<1x1x32xf32>
    %319 = vector.broadcast %318 : vector<1x1x32xf32> to vector<2x8x32xf32>
    %320 = arith.mulf %293, %319 : vector<2x8x32xf32>
    %cst_79 = arith.constant 1.000000e+00 : f32
    %321 = vector.broadcast %cst_79 : f32 to vector<1x32xf32>
    %322 = arith.subf %321, %16 : vector<1x32xf32>
    %323 = vector.shape_cast %322 : vector<1x32xf32> to vector<1x1x32xf32>
    %324 = vector.broadcast %323 : vector<1x1x32xf32> to vector<2x8x32xf32>
    %325 = arith.mulf %306, %324 : vector<2x8x32xf32>
    %326 = arith.addf %320, %325 : vector<2x8x32xf32>
    %327 = vector.shape_cast %326 : vector<2x8x32xf32> to vector<16x32xf32>
    %328 = arith.truncf %327 : vector<16x32xf32> to vector<16x32xbf16>
    %c0_80 = arith.constant 0 : index
    %c0_81 = arith.constant 0 : index
    %c0_82 = arith.constant 0 : index
    %329 = vector.load %arg8[%c0_80, %c0_81, %c0_82] : memref<1x32x32xbf16, #tpu.memory_space<vmem>>, vector<1x32x32xbf16>
    %330 = vector.shape_cast %329 : vector<1x32x32xbf16> to vector<32x32xbf16>
    %cst_83 = arith.constant dense<0.000000e+00> : vector<16x32xf32>
    %331 = tpu.matmul %317, %330, %cst_83 {dimension_numbers = #tpu.dot_dimension_numbers<[1], [0], [0], [1], [0, 0, 1, 1], [], []>} : vector<16x32xbf16>, vector<32x32xbf16>, vector<16x32xf32> -> vector<16x32xf32>
    %cst_84 = arith.constant 0.000000e+00 : f32
    %332 = vector.broadcast %cst_84 : f32 to vector<16x32xf32>
    %333 = arith.maximumf %331, %332 : vector<16x32xf32>
    %334 = arith.mulf %333, %333 : vector<16x32xf32>
    %335 = arith.truncf %334 : vector<16x32xf32> to vector<16x32xbf16>
    %c0_85 = arith.constant 0 : index
    %c0_86 = arith.constant 0 : index
    %c0_87 = arith.constant 0 : index
    %336 = vector.load %arg9[%c0_85, %c0_86, %c0_87] : memref<1x32x32xbf16, #tpu.memory_space<vmem>>, vector<1x32x32xbf16>
    %337 = vector.shape_cast %336 : vector<1x32x32xbf16> to vector<32x32xbf16>
    %cst_88 = arith.constant dense<0.000000e+00> : vector<16x32xf32>
    %338 = tpu.matmul %335, %337, %cst_88 {dimension_numbers = #tpu.dot_dimension_numbers<[1], [0], [0], [1], [0, 0, 1, 1], [], []>} : vector<16x32xbf16>, vector<32x32xbf16>, vector<16x32xf32> -> vector<16x32xf32>
    %c0_89 = arith.constant 0 : index
    %c0_90 = arith.constant 0 : index
    %c0_91 = arith.constant 0 : index
    %339 = vector.load %arg10[%c0_89, %c0_90, %c0_91] : memref<1x32x32xbf16, #tpu.memory_space<vmem>>, vector<1x32x32xbf16>
    %340 = vector.shape_cast %339 : vector<1x32x32xbf16> to vector<32x32xbf16>
    %cst_92 = arith.constant dense<0.000000e+00> : vector<16x32xf32>
    %341 = tpu.matmul %328, %340, %cst_92 {dimension_numbers = #tpu.dot_dimension_numbers<[1], [0], [0], [1], [0, 0, 1, 1], [], []>} : vector<16x32xbf16>, vector<32x32xbf16>, vector<16x32xf32> -> vector<16x32xf32>
    %342 = arith.negf %341 : vector<16x32xf32>
    %343 = math.exp %342 : vector<16x32xf32>
    %cst_93 = arith.constant 1.000000e+00 : f32
    %344 = vector.broadcast %cst_93 : f32 to vector<16x32xf32>
    %345 = arith.addf %344, %343 : vector<16x32xf32>
    %346 = arith.divf %344, %345 : vector<16x32xf32>
    %c0_94 = arith.constant 0 : index
    %c0_95 = arith.constant 0 : index
    %c0_96 = arith.constant 0 : index
    %347 = vector.load %arg11[%c0_94, %c0_95, %c0_96] : memref<2x8x32xf32, #tpu.memory_space<vmem>>, vector<2x8x32xf32>
    %348 = arith.mulf %346, %338 : vector<16x32xf32>
    %349 = vector.shape_cast %348 : vector<16x32xf32> to vector<2x8x32xf32>
    %350 = arith.addf %347, %349 : vector<2x8x32xf32>
    %c0_97 = arith.constant 0 : index
    %c0_98 = arith.constant 0 : index
    %c0_99 = arith.constant 0 : index
    %351 = vector.load %arg11[%c0_97, %c0_98, %c0_99] : memref<2x8x32xf32, #tpu.memory_space<vmem>>, vector<2x8x32xf32>
    tpu.vector_store %arg11[%c0_97, %c0_98, %c0_99], %350 {strides = array<i32>} : memref<2x8x32xf32, #tpu.memory_space<vmem>>, vector<2x8x32xf32>,
    %c1_i32_100 = arith.constant 1 : i32
    %352 = arith.cmpi eq, %arg1, %c1_i32_100 : i32
    %353 = arith.extui %352 : i1 to i32
    %c0_i32_101 = arith.constant 0 : i32
    %354 = arith.cmpi ne, %353, %c0_i32_101 : i32
    scf.if %354 {
      %c0_102 = arith.constant 0 : index
      %c0_103 = arith.constant 0 : index
      %c0_104 = arith.constant 0 : index
      %355 = vector.load %arg11[%c0_102, %c0_103, %c0_104] : memref<2x8x32xf32, #tpu.memory_space<vmem>>, vector<2x8x32xf32>
      %356 = vector.extract_strided_slice %4 {offsets = [12, 0], sizes = [1, 32], strides = [1, 1]} : vector<16x32xf32> to vector<1x32xf32>
      %357 = vector.extract_strided_slice %4 {offsets = [13, 0], sizes = [1, 32], strides = [1, 1]} : vector<16x32xf32> to vector<1x32xf32>
      %cst_105 = arith.constant dense<0.000000e+00> : vector<2x8xf32>
      %358 = vector.multi_reduction <add>, %355, %cst_105 [2] : vector<2x8x32xf32> to vector<2x8xf32>
      %359 = vector.shape_cast %358 : vector<2x8xf32> to vector<2x8x1xf32>
      %cst_106 = arith.constant 3.200000e+01 : f32
      %360 = vector.broadcast %cst_106 : f32 to vector<2x8x1xf32>
      %361 = arith.divf %359, %360 : vector<2x8x1xf32>
      %362 = vector.broadcast %361 : vector<2x8x1xf32> to vector<2x8x32xf32>
      %363 = arith.subf %355, %362 : vector<2x8x32xf32>
      %364 = arith.mulf %363, %363 : vector<2x8x32xf32>
      %cst_107 = arith.constant dense<0.000000e+00> : vector<2x8xf32>
      %365 = vector.multi_reduction <add>, %364, %cst_107 [2] : vector<2x8x32xf32> to vector<2x8xf32>
      %366 = vector.shape_cast %365 : vector<2x8xf32> to vector<2x8x1xf32>
      %cst_108 = arith.constant 3.200000e+01 : f32
      %367 = vector.broadcast %cst_108 : f32 to vector<2x8x1xf32>
      %368 = arith.divf %366, %367 : vector<2x8x1xf32>
      %369 = vector.broadcast %361 : vector<2x8x1xf32> to vector<2x8x32xf32>
      %370 = arith.subf %355, %369 : vector<2x8x32xf32>
      %cst_109 = arith.constant 9.99999974E-6 : f32
      %371 = vector.broadcast %cst_109 : f32 to vector<2x8x1xf32>
      %372 = arith.addf %368, %371 : vector<2x8x1xf32>
      %373 = math.rsqrt %372 : vector<2x8x1xf32>
      %374 = vector.broadcast %373 : vector<2x8x1xf32> to vector<2x8x32xf32>
      %375 = arith.mulf %370, %374 : vector<2x8x32xf32>
      %376 = vector.shape_cast %356 : vector<1x32xf32> to vector<1x1x32xf32>
      %377 = vector.broadcast %376 : vector<1x1x32xf32> to vector<2x8x32xf32>
      %378 = arith.mulf %375, %377 : vector<2x8x32xf32>
      %379 = vector.shape_cast %357 : vector<1x32xf32> to vector<1x1x32xf32>
      %380 = vector.broadcast %379 : vector<1x1x32xf32> to vector<2x8x32xf32>
      %381 = arith.addf %378, %380 : vector<2x8x32xf32>
      %c0_110 = arith.constant 0 : index
      %c0_111 = arith.constant 0 : index
      %c0_112 = arith.constant 0 : index
      %382 = vector.load %arg11[%c0_110, %c0_111, %c0_112] : memref<2x8x32xf32, #tpu.memory_space<vmem>>, vector<2x8x32xf32>
      tpu.vector_store %arg11[%c0_110, %c0_111, %c0_112], %381 {strides = array<i32>} : memref<2x8x32xf32, #tpu.memory_space<vmem>>, vector<2x8x32xf32>,
    } else {
    }
    return
  }
  func.func @transform_0(%arg0: i32, %arg1: i32) -> (i32, i32, i32) {
    %c0_i32 = arith.constant 0 : i32
    %c0_i32_0 = arith.constant 0 : i32
    %c0_i32_1 = arith.constant 0 : i32
    return %arg0, %c0_i32, %c0_i32_0 : i32, i32, i32
  }
  func.func @transform_1(%arg0: i32, %arg1: i32) -> (i32, i32, i32) {
    %c0_i32 = arith.constant 0 : i32
    %c0_i32_0 = arith.constant 0 : i32
    %c0_i32_1 = arith.constant 0 : i32
    return %arg1, %c0_i32, %c0_i32_0 : i32, i32, i32
  }
  func.func @transform_2(%arg0: i32, %arg1: i32) -> (i32, i32, i32) {
    %c0_i32 = arith.constant 0 : i32
    %c0_i32_0 = arith.constant 0 : i32
    %c0_i32_1 = arith.constant 0 : i32
    return %arg1, %c0_i32, %c0_i32_0 : i32, i32, i32
  }
  func.func @transform_3(%arg0: i32, %arg1: i32) -> (i32, i32, i32) {
    %c0_i32 = arith.constant 0 : i32
    %c0_i32_0 = arith.constant 0 : i32
    %c0_i32_1 = arith.constant 0 : i32
    return %arg1, %c0_i32, %c0_i32_0 : i32, i32, i32
  }
  func.func @transform_4(%arg0: i32, %arg1: i32) -> (i32, i32, i32) {
    %c0_i32 = arith.constant 0 : i32
    %c0_i32_0 = arith.constant 0 : i32
    %c0_i32_1 = arith.constant 0 : i32
    return %arg1, %c0_i32, %c0_i32_0 : i32, i32, i32
  }
  func.func @transform_5(%arg0: i32, %arg1: i32) -> (i32, i32, i32) {
    %c0_i32 = arith.constant 0 : i32
    %c0_i32_0 = arith.constant 0 : i32
    %c0_i32_1 = arith.constant 0 : i32
    return %arg1, %c0_i32, %c0_i32_0 : i32, i32, i32
  }
  func.func @transform_6(%arg0: i32, %arg1: i32) -> (i32, i32, i32) {
    %c0_i32 = arith.constant 0 : i32
    %c0_i32_0 = arith.constant 0 : i32
    %c0_i32_1 = arith.constant 0 : i32
    return %arg1, %c0_i32, %c0_i32_0 : i32, i32, i32
  }
  func.func @transform_7(%arg0: i32, %arg1: i32) -> (i32, i32, i32) {
    %c0_i32 = arith.constant 0 : i32
    %c0_i32_0 = arith.constant 0 : i32
    %c0_i32_1 = arith.constant 0 : i32
    return %arg1, %c0_i32, %c0_i32_0 : i32, i32, i32
  }
  func.func @transform_8(%arg0: i32, %arg1: i32) -> (i32, i32, i32) {
    %c0_i32 = arith.constant 0 : i32
    %c0_i32_0 = arith.constant 0 : i32
    %c0_i32_1 = arith.constant 0 : i32
    return %arg1, %c0_i32, %c0_i32_0 : i32, i32, i32
  }
  func.func @transform_9(%arg0: i32, %arg1: i32) -> (i32, i32, i32) {
    %c0_i32 = arith.constant 0 : i32
    %c0_i32_0 = arith.constant 0 : i32
    %c0_i32_1 = arith.constant 0 : i32
    return %arg0, %c0_i32, %c0_i32_0 : i32, i32, i32
  }
}

</mosaic_0001>

<bundles_post_ra>
// kernel: rwkv_lm_head_forward.3
= control target key start
LH: loop header
LB: loop body
LE: loop exit
PB: predicated region body
PF: predicated region fallthrough
CT: control target
= control target key end

     0   :  { %vm52_vm0 = vcmask 261120   ;;  %s186_s1 = inlined_call_operand.vmem [shape: bf16[32,128], index: 1, kind: input, shape index: {}]   ;;  %s187_s0 = inlined_call_operand.vmem [shape: bf16[32,32], index: 0, kind: input, shape index: {}]   ;;  %s188_s2 = inlined_call_operand.vmem [shape: f32[1,128], index: 2, kind: input, shape index: {}]   ;;  %s189_s3 = inlined_call_operand.vmem [shape: f32[32,128], index: 3, kind: output, shape index: {}]  }
   0x1   :  { %v135_v0 = vld [vmem:[%s186_s1 + $0x8] sm:$0xff]   ;;  %v136_v1 = vld [vmem:[%s186_s1] sm:$0xff]  }
   0x2   :  { %127 = vmatprep.subr.bf16.mxu0 %v135_v0  ;;  %v137_v2 = vld [vmem:[%s187_s0] sm:$0xff]   ;;  %v138_v3 = vld [vmem:[%s187_s0 + $0x8] sm:$0xff]  }
   0x3   :  { %128 = vmatpush3.bf16.msra.mxu0 %v135_v0  ;;  %131 = vmatprep.mubr.msk.bf16.mxu0 %vm52_vm0, %v137_v2  ;;  %v116_v4 = vld [vmem:[%s188_s2] ss:$0 sm:$0xff] }
   0x4   :  { %129 = vmatprep.subr.bf16.mxu0 %v136_v1 }
   0x7   :  { %130 = vmatpush3.bf16.msra.mxu0 %v136_v1 }
   0xa   :  { %132 = vmatmul.mubr.msk.bf16.vlgmr.msra.gmra.mxu0 %vm52_vm0, %v138_v3 }
  0xca   :  { %v133_v5 = vpop.f32.mrf.mxu0 }
  0xcb   :  { %v102_v6 = vadd.f32 %v133_v5, %v116_v4 }
  0xcc   :  { %v93_v7 = vpop.f32.mrf.mxu0 }
  0xcd   :  { %110 = vst [vmem:[%s189_s3 + $0x10] sm:$0xff] %v102_v6  ;;  %v94_v8 = vadd.f32 %v116_v4, %v93_v7 }
  0xce   :  { %v134_v9 = vpop.f32.mrf.mxu0 }
  0xcf   :  { %108 = vst [vmem:[%s189_s3] sm:$0xff] %v94_v8  ;;  %v105_v10 = vadd.f32 %v134_v9, %v116_v4 }
  0xd0   :  { %v96_v11 = vpop.f32.mrf.mxu0 }
  0xd1   :  { %111 = vst [vmem:[%s189_s3 + $0x18] sm:$0xff] %v105_v10  ;;  %v97_v12 = vadd.f32 %v116_v4, %v96_v11 }
  0xd3   :  { %109 = vst [vmem:[%s189_s3 + $0x8] sm:$0xff] %v97_v12 }

// kernel: rwkv_lm_head_forward.2
= control target key start
LH: loop header
LB: loop body
LE: loop exit
PB: predicated region body
PF: predicated region fallthrough
CT: control target
= control target key end

     0   :  { %s1934_s30 = smov 0   ;;  %s1936_s10 = smov 0   ;;  %s2365_s0 = inlined_call_operand.vmem [shape: f32[4,8,32], index: 0, kind: input, shape index: {}]   ;;  %s2366_s1 = inlined_call_operand.vmem [shape: f32[2,16,32], index: 1, kind: input, shape index: {}]   ;;  %s2367_s2 = inlined_call_operand.vmem [shape: bf16[2,32,32], index: 2, kind: input, shape index: {}]   ;;  %s2368_s3 = inlined_call_operand.vmem [shape: bf16[2,32,32], index: 3, kind: input, shape index: {}]   ;;  %s2369_s4 = inlined_call_operand.vmem [shape: bf16[2,32,32], index: 4, kind: input, shape index: {}]   ;;  %s2370_s5 = inlined_call_operand.vmem [shape: bf16[2,32,32], index: 5, kind: input, shape index: {}]   ;;  %s2371_s6 = inlined_call_operand.vmem [shape: bf16[2,32,32], index: 6, kind: input, shape index: {}]   ;;  %s2372_s7 = inlined_call_operand.vmem [shape: bf16[2,32,32], index: 7, kind: input, shape index: {}]   ;;  %s2373_s8 = inlined_call_operand.vmem [shape: bf16[2,32,32], index: 8, kind: input, shape index: {}]   ;;  %s2374_s9 = inlined_call_operand.vmem [shape: f32[4,8,32], index: 9, kind: output, shape index: {}]  }
   0x1   :  { %2375 = sst [smem:[#allocation7_spill]] %s2365_s0  ;;  %s1938_s11 = smov 0  }
   0x2   :  { %2376 = sst [smem:[#allocation8_spill]] %s2366_s1  ;;  %s1940_s12 = smov 0  }
   0x3   :  { %2377 = sst [smem:[#allocation9_spill]] %s2367_s2  ;;  %s1942_s13 = smov 0  }
   0x4   :  { %2378 = sst [smem:[#allocation10_spill]] %s2368_s3 }
   0x5   :  { %2379 = sst [smem:[#allocation11_spill]] %s2369_s4 }
   0x6 LB: > { %s28_s14 = sadd.s32 1, %s1872_s11  ;;  %s31_s15 = sadd.s32 1, %s1876_s12  ;;  %s1880_s13 = sphi %s1942_s13, %s19_s13   ;;  %s1876_s12 = sphi %s1940_s12, %s2390_s12   ;;  %s1872_s11 = sphi %s1938_s11, %s2389_s11   ;;  %s1868_s10 = sphi %s1936_s10, %s2388_s10   ;;  %s1864_s30 = sphi %s1934_s30, %s2387_s30  }
   0x7   : > { %p29_p0 = scmp.ge.s32.totalorder %s28_s14, 2  ;;  %p1610_p1 = scmp.ge.s32.totalorder %s1880_s13, 1 }
   0x8   : > { %p380_p2 = scmp.lt.s32.totalorder %s1880_s13, 5 }
   0x9   : > { %s2392_s14 = smov (%p29_p0, %s28_s14), 0  ;;  %s2394_s15 = smov (!%p29_p0, %s31_s15), %s1876_s12 }
   0xa   : > { %p381_p3 = pnand %p1610_p1, %p380_p2  ;;  %p33_p4 = scmp.ge.s32.totalorder %s2394_s15, 2 }
   0xb   : > { %s1611_s16 = sshll.u32 (!%p381_p3), %s1868_s10, 1  ;;  %p462_p5 = scmp.lt.s32.totalorder (!%p381_p3), %s1864_s30, 1 }
   0xc   : > { %s2396_s15 = smov (%p33_p4, %s2394_s15), 0  ;;  %384 = sbr.rel (%p381_p3) target bundleno = 1912 (0x778), region = 56 }
   0xd   : > { %2380 = sst [smem:[#allocation6_spill]] %s2396_s15  ;;  %p457_p6 = scmp.lt.s32.totalorder (!%p381_p3), %s1611_s16, 3 }
   0xe   : > { %s2381_s1 = sld [smem:[#allocation8_spill]] (!%p381_p3)  ;;  %p1631_p7 = scmp.ne.s32.totalorder (!%p381_p3), %s1864_s30, 0 }
   0xf   : > { %s2382_s0 = sld [smem:[#allocation7_spill]] (!%p381_p3) }
  0x10   : > { %s2383_s2 = sld [smem:[#allocation9_spill]] (!%p381_p3) }
  0x11   : > { %s463_s17 = scalar_select %p462_p5, %s1864_s30, 1 }
  0x12   : > { %s2398_s16 = smov (!%p457_p6, %s1611_s16), 3  ;;  %s2384_s3 = sld [smem:[#allocation10_spill]] }
  0x13   : > { %s1661_s18 = sshll.u32 %s463_s17, 4  ;;  %s1612_s19 = sshll.u32 %s2398_s16, 3 }
  0x14   : > { %s1971_s22 = scalar_lea.vmem %s2381_s1, %s1661_s18  ;;  %s2385_s4 = sld [smem:[#allocation11_spill]] }
  0x15   : > { %s460_s25 = scalar_lea.vmem %s2382_s0, %s1612_s19  ;;  %s1994_s23 = scalar_lea.vmem %s2370_s5, %s1661_s18 }
  0x16   : > { %s1979_s28 = scalar_lea.vmem %s2383_s2, %s1661_s18  ;;  %s1999_s26 = scalar_lea.vmem %s2371_s6, %s1661_s18 }
  0x17   : > { %s2004_s29 = scalar_lea.vmem %s2372_s7, %s1661_s18  ;;  %s2009_s16 = scalar_lea.vmem %s2373_s8, %s1661_s18 }
  0x18   : > { %s1984_s15 = scalar_lea.vmem %s2384_s3, %s1661_s18  ;;  %s2014_s1 = scalar_lea.vmem %s2374_s9, %s1612_s19 }
  0x19   : > { %512 = sbr.rel (%p1631_p7) target bundleno = 32 (0x20), region = 60 }
  0x1a   : > { %s1989_s20 = scalar_lea.vmem %s2385_s4, %s1661_s18 }
  0x1e   : > { %v513_v0 = vld [vmem:[%s460_s25] sm:$0xff]  ;;  %vm515_vm0 = vcmask 261120   ;;  %v514_v1 = vld [vmem:[%s460_s25 + $0x8] sm:$0xff] }
  0x1f   : > { %516 = vst.msk [vmem:[%s2014_s1] sm:$0xff] %vm515_vm0, %v513_v0  ;;  %517 = vst.msk [vmem:[%s2014_s1 + $0x8] sm:$0xff] %vm515_vm0, %v514_v1 }
  0x20 PF: > { %vm527_vm1 = vcmask 261120   ;;  %v1788_v16 = vld [vmem:[%s1979_s28 + $0x8] sm:$0xff]   ;;  %v1882_v18 = vmov 0.0   ;;  %v1790_v19 = vld [vmem:[%s1979_s28] sm:$0xff]   ;;  %vm1883_vm2 = vmmov 0   ;;  %v520_v25 = vlaneseq  ;;  %p1658_p8 = scmp.ne.s32.totalorder %s1864_s30, 1 }
  0x21   : > { %v1789_v17 = vld [vmem:[%s1984_s15 + $0x8] sm:$0xff]   ;;  %1690 = vmatprep.subr.bf16.mxu0 %v1882_v18  ;;  %1698 = vmatprep.subr.bf16.mxu1 %v1882_v18  ;;  %v1791_v20 = vld [vmem:[%s1984_s15] sm:$0xff]   ;;  %vm1001_vm4 = vcmask 1040384   ;;  %vm1004_vm5 = vcmask 1041408   ;;  %vm1007_vm6 = vcmask 1042432   ;;  %vm1010_vm7 = vcmask 1043456  }
  0x22   : > { %1691 = vmatpush3.bf16.msra.mxu0 %v1788_v16  ;;  %1699 = vmatpush3.bf16.msra.mxu1 %v1789_v17  ;;  %v2047_v28 = vshrl.u32 %v520_v25, 7  ;;  %v2051_v30 = vld [vmem:[%s1971_s22] sm:$0xff]  ;;  %v2069_v53 = vld [vmem:[%s1971_s22 + $0x8] sm:$0xff]  ;;  %vm1013_vm8 = vcmask 1044480   ;;  %vm1016_vm9 = vcmask 1045504   ;;  %vm1019_vm10 = vcmask 1046528  }
  0x23   : > { %1692 = vmatprep.subr.bf16.mxu0 %v1882_v18  ;;  %1700 = vmatprep.subr.bf16.mxu1 %v1882_v18  ;;  %v577_v40 = vsub.f32 1.0, %v2051_v30  ;;  %v2072_v54 = vsub.f32 1.0, %v2069_v53  ;;  %v824_v25 = vsub.f32 0.0, %v2051_v30 }
  0x24   : > { %1694 = vmatprep.mubr.msk.bf16.mxu0 %vm1883_vm2, %v1882_v18  ;;  %1702 = vmatprep.mubr.msk.bf16.mxu1 %vm1883_vm2, %v1882_v18  ;;  %v557_v29 = vsub.s32 0, %v2047_v28  ;;  %v563_v31 = vsub.s32 1, %v2047_v28  ;;  %vm522_vm3 = vcmp.gt.s32.totalorder %v2047_v28, 0  ;;  %v573_v42 = vsub.s32 6, %v2047_v28 }
  0x25   : > { %v2061_v41 = vsel %vm522_vm3, 1.0, %v1882_v18  ;;  %v589_v43 = vsub.s32 7, %v2047_v28 }
  0x26   : > { %v2020_v2 = vld [vmem:[%s2014_s1] sm:$0xff]  ;;  %v2023_v3 = vld [vmem:[%s2014_s1 + $0x8] sm:$0xff]  ;;  %1693 = vmatpush3.bf16.msra.mxu0 %v1790_v19  ;;  %1701 = vmatpush3.bf16.msra.mxu1 %v1791_v20  ;;  %v558_v32 = vrot.slane %v2051_v30, %v557_v29  ;;  %v564_v35 = vrot.slane %v2051_v30, %v563_v31  ;;  %v581_v48 = vrot.slane %v577_v40, %v573_v42 }
  0x27   : > { %v528_v4 = vsel %vm527_vm1, %v2020_v2, 0.0  ;;  %v531_v5 = vsel %vm527_vm1, %v2023_v3, 0.0  ;;  %1706 = vmatprep.subr.bf16.mxu0 %v1882_v18  ;;  %1714 = vmatprep.subr.bf16.mxu1 %v1882_v18  ;;  %v596_v49 = vrot.slane %v577_v40, %v589_v43  ;;  %v574_v50 = vrot.slane %v2051_v30, %v573_v42  ;;  %v1794_v20 = vld [vmem:[%s1994_s23 + $0x8] sm:$0xff]  }
  0x28   : > { %529 = vadd.xlane.f32.xlu0 %v528_v4  ;;  %v590_v51 = vrot.slane %v2051_v30, %v589_v43  ;;  %v612_v0 = vrot.slane %v2072_v54, %v557_v29 }
  0x2c   : > { %532 = vadd.xlane.f32.xlu0 %v531_v5 }
  0xb1   : > { %v530_v6 = vpop.xlane.xlu0 %529 }
  0xb2   : > { %v535_v7 = vmul.f32 0.03125, %v530_v6 }
  0xb4   : > { %v537_v8 = vsub.f32 %v2020_v2, %v535_v7  ;;  %v1792_v7 = vld [vmem:[%s1989_s20 + $0x8] sm:$0xff]  }
  0xb5   : > { %v533_v9 = vpop.xlane.xlu0 %532 }
  0xb6   : > { %v536_v10 = vmul.f32 0.03125, %v533_v9  ;;  %v539_v11 = vmul.f32 %v537_v8, %v537_v8 }
  0xb8   : > { %v538_v12 = vsub.f32 %v2023_v3, %v536_v10  ;;  %v541_v13 = vsel %vm527_vm1, %v539_v11, 0.0  ;;  %v605_v10 = vrot.slane %v2069_v53, %v557_v29 }
  0xb9   : > { %542 = vadd.xlane.f32.xlu1 %v541_v13 }
  0xba   : > { %v540_v14 = vmul.f32 %v538_v12, %v538_v12 }
  0xbc   : > { %v544_v15 = vsel %vm527_vm1, %v540_v14, 0.0  ;;  %v1793_v14 = vld [vmem:[%s1989_s20] sm:$0xff]  }
  0xbd   : > { %545 = vadd.xlane.f32.xlu1 %v544_v15 }
 0x142   : > { %v543_v21 = vpop.xlane.xlu1 %542 }
 0x143   : > { %v547_v22 = vmul.f32 0.03125, %v543_v21  ;;  %v1795_v21 = vld [vmem:[%s1994_s23] sm:$0xff]  }
 0x145   : > { %v549_v23 = vadd.f32 1e-05, %v547_v22  ;;  %v814_v22 = vsub.s32 4, %v2047_v28 }
 0x146   : > { %v546_v24 = vpop.xlane.xlu1 %545 }
 0x147   : > { %1802 = vrsqrt.f32 %v549_v23  ;;  %v548_v26 = vmul.f32 0.03125, %v546_v24  ;;  %v2096_v23 = vsub.s32 5, %v2047_v28  ;;  %v815_v24 = vrot.slane %v2051_v30, %v814_v22 }
 0x149   : > { %v550_v27 = vadd.f32 1e-05, %v548_v26  ;;  %v821_v26 = vrot.slane %v2051_v30, %v2096_v23 }
 0x14b   : > { %1804 = vrsqrt.f32 %v550_v27 }
 0x154   : > { %v1803_v33 = vpop.eup %1802 }
 0x155   : > { %v553_v34 = vmul.f32 %v1803_v33, %v537_v8  ;;  %v828_v33 = vrot.slane %v824_v25, %v2096_v23 }
 0x157   : > { %v559_v36 = vmul.f32 %v558_v32, %v553_v34 }
 0x158   : > { %v1805_v37 = vpop.eup %1804 }
 0x159   : > { %v554_v38 = vmul.f32 %v1805_v37, %v538_v12  ;;  %v565_v39 = vadd.f32 %v564_v35, %v559_v36 }
 0x15b   : > { %v560_v44 = vmul.f32 %v558_v32, %v554_v38  ;;  %v567_v45 = vrot.slane %v565_v39, 7  ;;  %v575_v58 = vmul.f32 %v574_v50, %v565_v39  ;;  %v591_v59 = vmul.f32 %v590_v51, %v565_v39 }
 0x15c   : > { %v606_v15 = vmul.f32 %v605_v10, %v565_v39 }
 0x15d   : > { %v566_v46 = vadd.f32 %v564_v35, %v560_v44  ;;  %v568_v47 = vmul.f32 %v2061_v41, %v567_v45 }
 0x15f   : > { %v569_v52 = vrot.slane %v566_v46, 7  ;;  %v582_v56 = vmul.f32 %v581_v48, %v568_v47  ;;  %v597_v57 = vmul.f32 %v596_v49, %v568_v47  ;;  %v576_v60 = vmul.f32 %v574_v50, %v566_v46 }
 0x160   : > { %v592_v62 = vmul.f32 %v590_v51, %v566_v46  ;;  %v607_v12 = vmul.f32 %v605_v10, %v566_v46  ;;  %v613_v13 = vmul.f32 %v612_v0, %v568_v47 }
 0x161   : > { %v570_v55 = vmul.f32 %v2061_v41, %v569_v52  ;;  %v584_v1 = vadd.f32 %v582_v56, %v575_v58  ;;  %v599_v5 = vadd.f32 %v597_v57, %v591_v59 }
 0x162   : > { %v615_v17 = vadd.f32 %v613_v13, %v606_v15 }
 0x163   : > { %v583_v61 = vmul.f32 %v581_v48, %v570_v55  ;;  %v598_v63 = vmul.f32 %v596_v49, %v570_v55  ;;  %v614_v11 = vmul.f32 %v612_v0, %v570_v55 }
 0x165   : > { %v585_v4 = vadd.f32 %v583_v61, %v576_v60  ;;  %v600_v6 = vadd.f32 %v598_v63, %v592_v62  ;;  %v616_v16 = vadd.f32 %v614_v11, %v607_v12 }
 0x167   : > { %v586_v8 = vpack.c.bf16 %v585_v4, %v584_v1  ;;  %v601_v9 = vpack.c.bf16 %v600_v6, %v599_v5  ;;  %v617_v19 = vpack.c.bf16 %v616_v16, %v615_v17 }
 0x169   : > { %1695 = vmatmul.mubr.msk.bf16.vlgmr.msra.gmra.mxu0 %vm527_vm1, %v586_v8  ;;  %1703 = vmatmul.mubr.msk.bf16.vlgmr.msra.gmra.mxu1 %vm527_vm1, %v601_v9 }
 0x16a   : > { %1707 = vmatpush3.bf16.msra.mxu0 %v1792_v7  ;;  %1710 = vmatprep.mubr.msk.bf16.mxu0 %vm1883_vm2, %v1882_v18 }
 0x16b   : > { %1708 = vmatprep.subr.bf16.mxu0 %v1882_v18  ;;  %1718 = vmatprep.mubr.msk.bf16.mxu1 %vm1883_vm2, %v1882_v18 }
 0x16c   : > { %1715 = vmatpush3.bf16.msra.mxu1 %v1794_v20 }
 0x16d   : > { %1716 = vmatprep.subr.bf16.mxu1 %v1882_v18 }
 0x16e   : > { %1709 = vmatpush3.bf16.msra.mxu0 %v1793_v14 }
 0x16f   : > { %1722 = vmatprep.subr.bf16.mxu0 %v1882_v18 }
 0x170   : > { %1717 = vmatpush3.bf16.msra.mxu1 %v1795_v21 }
 0x171   : > { %1711 = vmatmul.mubr.msk.bf16.vlgmr.msra.gmra.mxu0 %vm527_vm1, %v617_v19  ;;  %1730 = vmatprep.subr.bf16.mxu1 %v1882_v18 }
 0x172   : > { %1726 = vmatprep.mubr.msk.bf16.mxu0 %vm1883_vm2, %v1882_v18 }
 0x229   : > { %v671_v27 = vpop.f32.mrf.mxu0  ;;  %v731_v29 = vpop.f32.mrf.mxu1 }
 0x22a   : > { %v816_v32 = vadd.f32 %v815_v24, %v671_v27 }
 0x22b   : > { %v1696_v34 = vpop.f32.mrf.mxu0  ;;  %v1704_v35 = vpop.f32.mrf.mxu1 }
 0x22c   : > { %v822_v36 = vmax.f32 %v816_v32, %v821_v26 }
 0x22d   : > { %v674_v37 = vpop.f32.mrf.mxu0  ;;  %v734_v38 = vpop.f32.mrf.mxu1 }
 0x22e   : > { %v829_v39 = vsub.f32 %v828_v33, %v822_v36  ;;  %v837_v40 = vsub.f32 %v816_v32, %v822_v36  ;;  %v817_v42 = vadd.f32 %v815_v24, %v674_v37 }
 0x22f   : > { %v1697_v43 = vpop.f32.mrf.mxu0  ;;  %v1705_v44 = vpop.f32.mrf.mxu1 }
 0x230   : > { %v831_v45 = vmul.f32 1.442695, %v829_v39  ;;  %v839_v46 = vmul.f32 1.442695, %v837_v40  ;;  %v823_v47 = vmax.f32 %v817_v42, %v821_v26 }
 0x231   : > { %v791_v48 = vpop.f32.mrf.mxu0 }
 0x232   : > { %1806 = vpow2.f32 %v831_v45  ;;  %v830_v49 = vsub.f32 %v828_v33, %v823_v47  ;;  %v838_v50 = vsub.f32 %v817_v42, %v823_v47  ;;  %v1642_v51 = vmul.f32 -1.442695, %v791_v48 }
 0x233   : > { %1808 = vpow2.f32 %v839_v46  ;;  %v1712_v52 = vpop.f32.mrf.mxu0 }
 0x234   : > { %v833_v55 = vmul.f32 1.442695, %v830_v49  ;;  %v841_v56 = vmul.f32 1.442695, %v838_v50  ;;  %1810 = vpow2.f32 %v1642_v51 }
 0x235   : > { %v794_v57 = vpop.f32.mrf.mxu0 }
 0x236   : > { %1812 = vpow2.f32 %v833_v55  ;;  %v1643_v58 = vmul.f32 -1.442695, %v794_v57 }
 0x237   : > { %1814 = vpow2.f32 %v841_v56  ;;  %v1713_v59 = vpop.f32.mrf.mxu0 }
 0x238   : > { %1816 = vpow2.f32 %v1643_v58 }
 0x23f   : > { %v1807_v60 = vpop.eup %1806 }
 0x240   : > { %v1809_v61 = vpop.eup %1808  ;;  %835 = vst.msk [vmem:[#allocation2] sm:$0xff] %vm527_vm1, %v1807_v60 }
 0x241   : > { %v1811_v62 = vpop.eup %1810  ;;  %843 = vst.msk [vmem:[#allocation3] sm:$0xff] %vm527_vm1, %v1809_v61  ;;  %v845_v63 = vmul.f32 %v1809_v61, %v731_v29 }
 0x242   : > { %v804_v0 = vadd.f32 1.0, %v1811_v62 }
 0x243   : > { %v1813_v1 = vpop.eup %1812  ;;  %847 = vst.msk [vmem:[#allocation4] sm:$0xff] %vm527_vm1, %v845_v63 }
 0x244   : > { %v1815_v4 = vpop.eup %1814  ;;  %836 = vst.msk [vmem:[#allocation2 + $0x8] sm:$0xff] %vm527_vm1, %v1813_v1  ;;  %1818 = vrcp.f32 %v804_v0 }
 0x245   : > { %v1817_v5 = vpop.eup %1816  ;;  %844 = vst.msk [vmem:[#allocation3 + $0x8] sm:$0xff] %vm527_vm1, %v1815_v4  ;;  %v846_v6 = vmul.f32 %v1815_v4, %v734_v38 }
 0x246   : > { %v805_v7 = vadd.f32 1.0, %v1817_v5 }
 0x247   : > { %v2110_v8 = vld [vmem:[#allocation2] sm:$0xff]  ;;  %848 = vst.msk [vmem:[#allocation4 + $0x8] sm:$0xff] %vm527_vm1, %v846_v6 }
 0x248   : > { %v855_v9 = vmul.f32 0.0, %v2110_v8  ;;  %1820 = vrcp.f32 %v805_v7  ;;  %v2114_v10 = vld [vmem:[#allocation3] sm:$0xff] }
 0x24a   : > { %v2116_v11 = vld [vmem:[#allocation4] sm:$0xff]  ;;  %v2119_v12 = vadd.f32 %v855_v9, %v2114_v10 }
 0x24b   : > { %v2122_v13 = vadd.f32 %v855_v9, %v2116_v11  ;;  %v2124_v14 = vld [vmem:[#allocation2 + $0x8] sm:$0xff] }
 0x24c   : > { %v873_v15 = vrot.slane %v2119_v12, 7  ;;  %v856_v16 = vmul.f32 0.0, %v2124_v14  ;;  %v2129_v19 = vld [vmem:[#allocation3 + $0x8] sm:$0xff] }
 0x24d   : > { %v863_v17 = vrot.slane %v2122_v13, 7 }
 0x24e   : > { %v877_v20 = vmul.f32 %v873_v15, %v2110_v8  ;;  %v2132_v21 = vld [vmem:[#allocation4 + $0x8] sm:$0xff]  ;;  %v2135_v24 = vadd.f32 %v856_v16, %v2129_v19 }
 0x24f   : > { %v867_v25 = vmul.f32 %v863_v17, %v2110_v8  ;;  %v2139_v26 = vadd.f32 %v856_v16, %v2132_v21 }
 0x250   : > { %v2142_v27 = vadd.f32 %v877_v20, %v2114_v10  ;;  %v874_v29 = vrot.slane %v2135_v24, 7 }
 0x251   : > { %v1819_v32 = vpop.eup %1818  ;;  %v2146_v33 = vadd.f32 %v867_v25, %v2116_v11  ;;  %v864_v34 = vrot.slane %v2139_v26, 7 }
 0x252   : > { %v893_v35 = vrot.slane %v2142_v27, 7  ;;  %v878_v36 = vmul.f32 %v874_v29, %v2124_v14  ;;  %810 = vst.msk [vmem:[#allocation5] sm:$0xff] %vm527_vm1, %v1819_v32 }
 0x253   : > { %v883_v37 = vrot.slane %v2146_v33, 7  ;;  %v868_v38 = vmul.f32 %v864_v34, %v2124_v14 }
 0x254   : > { %v897_v39 = vmul.f32 %v893_v35, %v2110_v8  ;;  %v2156_v40 = vadd.f32 %v878_v36, %v2129_v19 }
 0x255   : > { %v1821_v42 = vpop.eup %1820  ;;  %v887_v43 = vmul.f32 %v883_v37, %v2110_v8  ;;  %v2160_v44 = vadd.f32 %v868_v38, %v2132_v21 }
 0x256   : > { %v899_v45 = vadd.f32 %v897_v39, %v2114_v10  ;;  %v894_v46 = vrot.slane %v2156_v40, 7  ;;  %811 = vst.msk [vmem:[#allocation5 + $0x8] sm:$0xff] %vm527_vm1, %v1821_v42 }
 0x257   : > { %v2166_v47 = vadd.f32 %v887_v43, %v2116_v11  ;;  %v884_v48 = vrot.slane %v2160_v44, 7 }
 0x258   : > { %v913_v49 = vrot.slane %v899_v45, 7  ;;  %v898_v50 = vmul.f32 %v894_v46, %v2124_v14 }
 0x259   : > { %v903_v51 = vrot.slane %v2166_v47, 7  ;;  %v888_v52 = vmul.f32 %v884_v48, %v2124_v14 }
 0x25a   : > { %v917_v55 = vmul.f32 %v913_v49, %v2110_v8  ;;  %v2174_v56 = vadd.f32 %v898_v50, %v2129_v19 }
 0x25b   : > { %v907_v57 = vmul.f32 %v903_v51, %v2110_v8  ;;  %v2178_v58 = vadd.f32 %v888_v52, %v2132_v21 }
 0x25c   : > { %v919_v59 = vadd.f32 %v917_v55, %v2114_v10  ;;  %v914_v60 = vrot.slane %v2174_v56, 7 }
 0x25d   : > { %v2183_v61 = vadd.f32 %v907_v57, %v2116_v11  ;;  %v904_v62 = vrot.slane %v2178_v58, 7 }
 0x25e   : > { %v933_v63 = vrot.slane %v919_v59, 7  ;;  %v918_v0 = vmul.f32 %v914_v60, %v2124_v14 }
 0x25f   : > { %v923_v1 = vrot.slane %v2183_v61, 7  ;;  %v908_v4 = vmul.f32 %v904_v62, %v2124_v14  ;;  %v1022_v62 = vsel %vm1001_vm4, %v2119_v12, %v2142_v27 }
 0x260   : > { %v937_v5 = vmul.f32 %v933_v63, %v2110_v8  ;;  %v920_v6 = vadd.f32 %v918_v0, %v2129_v19  ;;  %v1024_v0 = vsel %vm1004_vm5, %v1022_v62, %v899_v45  ;;  %v1023_v45 = vsel %vm1001_vm4, %v2135_v24, %v2156_v40 }
 0x261   : > { %v927_v7 = vmul.f32 %v923_v1, %v2110_v8  ;;  %v2193_v9 = vadd.f32 %v908_v4, %v2132_v21  ;;  %v1003_v62 = vsel %vm1001_vm4, %v2139_v26, %v2160_v44 }
 0x262   : > { %v939_v15 = vadd.f32 %v937_v5, %v2114_v10  ;;  %v934_v16 = vrot.slane %v920_v6, 7 }
 0x263   : > { %v2197_v17 = vadd.f32 %v927_v7, %v2116_v11  ;;  %v924_v20 = vrot.slane %v2193_v9, 7 }
 0x264   : > { %v953_v25 = vrot.slane %v939_v15, 7  ;;  %v938_v29 = vmul.f32 %v934_v16, %v2124_v14  ;;  %v1026_v16 = vsel %vm1007_vm6, %v1024_v0, %v919_v59 }
 0x265   : > { %v943_v32 = vrot.slane %v2197_v17, 7  ;;  %v928_v34 = vmul.f32 %v924_v20, %v2124_v14 }
 0x266   : > { %v957_v35 = vmul.f32 %v953_v25, %v2110_v8  ;;  %v940_v36 = vadd.f32 %v938_v29, %v2129_v19  ;;  %v1028_v25 = vsel %vm1010_vm7, %v1026_v16, %v939_v15  ;;  %v1025_v15 = vsel %vm1004_vm5, %v1023_v45, %v2174_v56 }
 0x267   : > { %v947_v37 = vmul.f32 %v943_v32, %v2110_v8  ;;  %v2207_v38 = vadd.f32 %v928_v34, %v2132_v21 }
 0x268   : > { %v959_v39 = vadd.f32 %v957_v35, %v2114_v10  ;;  %v954_v42 = vrot.slane %v940_v36, 7 }
 0x269   : > { %v949_v43 = vadd.f32 %v947_v37, %v2116_v11  ;;  %v944_v46 = vrot.slane %v2207_v38, 7 }
 0x26a   : > { %v973_v48 = vrot.slane %v959_v39, 7  ;;  %v958_v49 = vmul.f32 %v954_v42, %v2124_v14  ;;  %v1030_v27 = vsel %vm1013_vm8, %v1028_v25, %v959_v39  ;;  %v1027_v39 = vsel %vm1007_vm6, %v1025_v15, %v920_v6 }
 0x26b   : > { %v948_v50 = vmul.f32 %v944_v46, %v2124_v14  ;;  %v963_v51 = vrot.slane %v949_v43, 7  ;;  %v1029_v24 = vsel %vm1010_vm7, %v1027_v39, %v940_v36 }
 0x26c   : > { %v977_v52 = vmul.f32 %v973_v48, %v2110_v8  ;;  %v960_v55 = vadd.f32 %v958_v49, %v2129_v19 }
 0x26d   : > { %v950_v57 = vadd.f32 %v948_v50, %v2132_v21  ;;  %v967_v1 = vmul.f32 %v963_v51, %v2110_v8  ;;  %v1002_v51 = vsel %vm1001_vm4, %v2122_v13, %v2146_v33  ;;  %v1006_v33 = vsel %vm1004_vm5, %v1003_v62, %v2178_v58 }
 0x26e   : > { %v979_v60 = vadd.f32 %v977_v52, %v2114_v10  ;;  %v974_v63 = vrot.slane %v960_v55, 7  ;;  %v1031_v48 = vsel %vm1013_vm8, %v1029_v24, %v960_v55  ;;  %v1005_v36 = vsel %vm1004_vm5, %v1002_v51, %v2166_v47 }
 0x26f   : > { %v964_v5 = vrot.slane %v950_v57, 7  ;;  %v969_v29 = vadd.f32 %v967_v1, %v2116_v11 }
 0x270   : > { %v993_v4 = vrot.slane %v979_v60, 7  ;;  %v978_v7 = vmul.f32 %v974_v63, %v2124_v14  ;;  %v1032_v35 = vsel %vm1016_vm9, %v1030_v27, %v979_v60 }
 0x271   : > { %v968_v59 = vmul.f32 %v964_v5, %v2124_v14  ;;  %v983_v40 = vrot.slane %v969_v29, 7 }
 0x272   : > { %v997_v20 = vmul.f32 %v993_v4, %v2110_v8  ;;  %v980_v12 = vadd.f32 %v978_v7, %v2129_v19  ;;  %v1045_v4 = vld [vmem:[#allocation5 + $0x8] sm:$0xff]  ;;  %v1056_v7 = vrot.slane %v2069_v53, %v563_v31 }
 0x273   : > { %v987_v50 = vmul.f32 %v983_v40, %v2110_v8 }
 0x274   : > { %v999_v32 = vadd.f32 %v997_v20, %v2114_v10  ;;  %v994_v34 = vrot.slane %v980_v12, 7  ;;  %v970_v10 = vadd.f32 %v968_v59, %v2132_v21  ;;  %v1033_v49 = vsel %vm1016_vm9, %v1031_v48, %v980_v12  ;;  %v1796_v48 = vld [vmem:[%s1999_s26 + $0x8] sm:$0xff]  }
 0x275   : > { %v989_v52 = vadd.f32 %v987_v50, %v2116_v11  ;;  %1723 = vmatpush3.bf16.msra.mxu0 %v1796_v48 }
 0x276   : > { %v1034_v37 = vsel %vm1019_vm10, %v1032_v35, %v999_v32  ;;  %v998_v42 = vmul.f32 %v994_v34, %v2124_v14  ;;  %v984_v6 = vrot.slane %v970_v10, 7  ;;  %1724 = vmatprep.subr.bf16.mxu0 %v1882_v18 }
 0x277   : > { %1822 = vrcp.f32 %v1034_v37 }
 0x278   : > { %v1000_v46 = vadd.f32 %v998_v42, %v2129_v19  ;;  %v1008_v19 = vsel %vm1007_vm6, %v1005_v36, %v2183_v61  ;;  %v988_v55 = vmul.f32 %v984_v6, %v2124_v14  ;;  %v1009_v14 = vsel %vm1007_vm6, %v1006_v33, %v2193_v9  ;;  %v1044_v9 = vld [vmem:[#allocation5] sm:$0xff] }
 0x279   : > { %v1011_v60 = vsel %vm1010_vm7, %v1008_v19, %v2197_v17  ;;  %v1012_v17 = vsel %vm1010_vm7, %v1009_v14, %v2207_v38  ;;  %v1149_v19 = vsub.s32 2, %v2047_v28 }
 0x27a   : > { %v1035_v56 = vsel %vm1019_vm10, %v1033_v49, %v1000_v46  ;;  %v1014_v8 = vsel %vm1013_vm8, %v1011_v60, %v949_v43  ;;  %v990_v61 = vadd.f32 %v988_v55, %v2132_v21  ;;  %v1015_v63 = vsel %vm1013_vm8, %v1012_v17, %v950_v57  ;;  %v1797_v49 = vld [vmem:[%s1999_s26] sm:$0xff]  }
 0x27b   : > { %1824 = vrcp.f32 %v1035_v56  ;;  %v1017_v13 = vsel %vm1016_vm9, %v1014_v8, %v969_v29  ;;  %v1018_v26 = vsel %vm1016_vm9, %v1015_v63, %v970_v10  ;;  %1725 = vmatpush3.bf16.msra.mxu0 %v1797_v49  ;;  %v1155_v55 = vsub.s32 3, %v2047_v28 }
 0x27c   : > { %v1020_v47 = vsel %vm1019_vm10, %v1017_v13, %v989_v52  ;;  %v1021_v58 = vsel %vm1019_vm10, %v1018_v26, %v990_v61  ;;  %1738 = vmatprep.subr.bf16.mxu0 %v1882_v18  ;;  %v1150_v60 = vrot.slane %v2051_v30, %v1149_v19  ;;  %v1166_v63 = vrot.slane %v2069_v53, %v1149_v19 }
 0x27d   : > { %v1156_v13 = vrot.slane %v2051_v30, %v1155_v55  ;;  %v1172_v26 = vrot.slane %v2072_v54, %v1149_v19 }
 0x284   : > { %v1823_v11 = vpop.eup %1822 }
 0x285   : > { %v1037_v43 = vmul.f32 %v1823_v11, %v1020_v47 }
 0x287   : > { %1040 = vst.msk [vmem:[#allocation2] sm:$0xff] %vm527_vm1, %v1037_v43 }
 0x288   : > { %v1825_v44 = vpop.eup %1824 }
 0x289   : > { %v1039_v0 = vmul.f32 %v1825_v44, %v1021_v58 }
 0x28b   : > { %1041 = vst.msk [vmem:[#allocation2 + $0x8] sm:$0xff] %vm527_vm1, %v1039_v0 }
 0x28e   : > { %v1042_v21 = vld [vmem:[#allocation2] sm:$0xff] }
 0x28f   : > { %v1046_v38 = vmul.f32 %v1044_v9, %v1042_v21 }
 0x292   : > { %v1043_v1 = vld [vmem:[#allocation2 + $0x8] sm:$0xff] }
 0x293   : > { %v1047_v5 = vmul.f32 %v1045_v4, %v1043_v1  ;;  %v1187_v4 = vrot.slane %v2072_v54, %v1155_v55 }
 0x295   : > { %v1048_v57 = vpack.c.bf16 %v1047_v5, %v1046_v38 }
 0x297   : > { %1719 = vmatmul.mubr.msk.bf16.vlgmr.msra.gmra.mxu1 %vm527_vm1, %v1048_v57  ;;  %v1181_v57 = vrot.slane %v2069_v53, %v1155_v55 }
 0x298   : > { %1734 = vmatprep.mubr.msk.bf16.mxu1 %vm1883_vm2, %v1882_v18 }
 0x357   : > { %v1106_v16 = vpop.f32.mrf.mxu1 }
 0x358   : > { %v1107_v20 = vadd.f32 %v1106_v16, %v1056_v7 }
 0x359   : > { %v1720_v25 = vpop.f32.mrf.mxu1 }
 0x35a   : > { %v1115_v12 = vadd.f32 %v1107_v20, %v2020_v2 }
 0x35b   : > { %v1109_v27 = vpop.f32.mrf.mxu1 }
 0x35c   : > { %v1110_v45 = vadd.f32 %v1109_v27, %v1056_v7  ;;  %1117 = vst.msk [vmem:[%s2014_s1] sm:$0xff] %vm527_vm1, %v1115_v12  ;;  %v1798_v7 = vld [vmem:[%s2009_s16 + $0x8] sm:$0xff]   ;;  %v1799_v27 = vld [vmem:[%s2009_s16] sm:$0xff]  }
 0x35d   : > { %v1721_v29 = vpop.f32.mrf.mxu1 }
 0x35e   : > { %v1116_v32 = vadd.f32 %v1110_v45, %v2023_v3 }
 0x360   : > { %1118 = vst.msk [vmem:[%s2014_s1 + $0x8] sm:$0xff] %vm527_vm1, %v1116_v32  ;;  %v1800_v32 = vld [vmem:[%s2004_s29 + $0x8] sm:$0xff]  }
 0x361   : > { %1731 = vmatpush3.bf16.msra.mxu1 %v1800_v32 }
 0x362   : > { %1732 = vmatprep.subr.bf16.mxu1 %v1882_v18 }
 0x363   : > { %v2293_v34 = vld [vmem:[%s2014_s1] sm:$0xff] }
 0x364   : > { %v1121_v2 = vsel %vm527_vm1, %v2293_v34, 0.0 }
 0x365   : > { %1122 = vadd.xlane.f32.xlu0 %v1121_v2 }
 0x367   : > { %v2290_v59 = vld [vmem:[%s2014_s1 + $0x8] sm:$0xff] }
 0x368   : > { %v1124_v31 = vsel %vm527_vm1, %v2290_v59, 0.0 }
 0x369   : > { %1125 = vadd.xlane.f32.xlu1 %v1124_v31  ;;  %v1801_v31 = vld [vmem:[%s2004_s29] sm:$0xff]  }
 0x36a   : > { %1733 = vmatpush3.bf16.msra.mxu1 %v1801_v31 }
 0x3ee   : > { %v1123_v15 = vpop.xlane.xlu0 %1122 }
 0x3ef   : > { %v1127_v3 = vmul.f32 0.03125, %v1123_v15 }
 0x3f1   : > { %v1129_v42 = vsub.f32 %v2293_v34, %v1127_v3 }
 0x3f2   : > { %v1126_v35 = vpop.xlane.xlu1 %1125 }
 0x3f3   : > { %v1128_v37 = vmul.f32 0.03125, %v1126_v35  ;;  %v1131_v40 = vmul.f32 %v1129_v42, %v1129_v42 }
 0x3f5   : > { %v1130_v39 = vsub.f32 %v2290_v59, %v1128_v37  ;;  %v1133_v46 = vsel %vm527_vm1, %v1131_v40, 0.0 }
 0x3f6   : > { %1134 = vadd.xlane.f32.xlu0 %v1133_v46 }
 0x3f7   : > { %v1132_v24 = vmul.f32 %v1130_v39, %v1130_v39 }
 0x3f9   : > { %v1136_v10 = vsel %vm527_vm1, %v1132_v24, 0.0 }
 0x3fa   : > { %1137 = vadd.xlane.f32.xlu1 %v1136_v10 }
 0x47f   : > { %v1135_v50 = vpop.xlane.xlu0 %1134 }
 0x480   : > { %v1139_v51 = vmul.f32 0.03125, %v1135_v50 }
 0x482   : > { %v1141_v52 = vadd.f32 1e-05, %v1139_v51 }
 0x483   : > { %v1138_v56 = vpop.xlane.xlu1 %1137 }
 0x484   : > { %v1140_v6 = vmul.f32 0.03125, %v1138_v56 }
 0x486   : > { %v1142_v36 = vadd.f32 1e-05, %v1140_v6 }
 0x488   : > { %1826 = vrsqrt.f32 %v1142_v36 }
 0x489   : > { %1828 = vrsqrt.f32 %v1141_v52 }
 0x495   : > { %v1827_v8 = vpop.eup %1826 }
 0x496   : > { %v1829_v62 = vpop.eup %1828  ;;  %v1146_v33 = vmul.f32 %v1827_v8, %v1130_v39 }
 0x497   : > { %v1145_v11 = vmul.f32 %v1829_v62, %v1129_v42 }
 0x498   : > { %v1152_v47 = vmul.f32 %v1150_v60, %v1146_v33 }
 0x499   : > { %v1151_v61 = vmul.f32 %v1150_v60, %v1145_v11 }
 0x49a   : > { %v1158_v14 = vadd.f32 %v1156_v13, %v1152_v47 }
 0x49b   : > { %v1157_v17 = vadd.f32 %v1156_v13, %v1151_v61 }
 0x49c   : > { %v1161_v43 = vrot.slane %v1158_v14, 7  ;;  %v1168_v21 = vmul.f32 %v1166_v63, %v1158_v14  ;;  %v1183_v12 = vmul.f32 %v1181_v57, %v1158_v14 }
 0x49d   : > { %v1159_v44 = vrot.slane %v1157_v17, 7  ;;  %v1167_v1 = vmul.f32 %v1166_v63, %v1157_v17 }
 0x49e   : > { %v1162_v58 = vmul.f32 %v2061_v41, %v1161_v43 }
 0x49f   : > { %v1160_v0 = vmul.f32 %v2061_v41, %v1159_v44  ;;  %v1182_v41 = vmul.f32 %v1181_v57, %v1157_v17 }
 0x4a0   : > { %v1174_v30 = vmul.f32 %v1172_v26, %v1162_v58  ;;  %v1189_v25 = vmul.f32 %v1187_v4, %v1162_v58 }
 0x4a1   : > { %v1173_v9 = vmul.f32 %v1172_v26, %v1160_v0  ;;  %v1188_v20 = vmul.f32 %v1187_v4, %v1160_v0 }
 0x4a2   : > { %v1176_v38 = vadd.f32 %v1174_v30, %v1168_v21  ;;  %v1191_v45 = vadd.f32 %v1189_v25, %v1183_v12 }
 0x4a3   : > { %v1175_v5 = vadd.f32 %v1173_v9, %v1167_v1  ;;  %v1190_v54 = vadd.f32 %v1188_v20, %v1182_v41 }
 0x4a5   : > { %v1177_v16 = vpack.c.bf16 %v1176_v38, %v1175_v5  ;;  %v1192_v29 = vpack.c.bf16 %v1191_v45, %v1190_v54 }
 0x4a7   : > { %1727 = vmatmul.mubr.msk.bf16.vlgmr.msra.gmra.mxu0 %vm527_vm1, %v1177_v16 }
 0x4a8   : > { %1739 = vmatpush3.bf16.msra.mxu0 %v1798_v7  ;;  %1742 = vmatprep.mubr.msk.bf16.mxu0 %vm1883_vm2, %v1882_v18 }
 0x4a9   : > { %1740 = vmatprep.subr.bf16.mxu0 %v1882_v18 }
 0x4ac   : > { %1741 = vmatpush3.bf16.msra.mxu0 %v1799_v27 }
 0x4af   : > { %1743 = vmatmul.mubr.msk.bf16.vlgmr.msra.gmra.mxu0 %vm527_vm1, %v1192_v29 }
 0x567   : > { %v1246_v2 = vpop.f32.mrf.mxu0 }
 0x568   : > { %v1253_v15 = vmax.f32 %v1246_v2, 0.0 }
 0x569   : > { %v1728_v35 = vpop.f32.mrf.mxu0 }
 0x56a   : > { %v1255_v42 = vmul.f32 %v1253_v15, %v1253_v15 }
 0x56b   : > { %v1249_v37 = vpop.f32.mrf.mxu0 }
 0x56c   : > { %v1254_v3 = vmax.f32 %v1249_v37, 0.0 }
 0x56d   : > { %v1729_v39 = vpop.f32.mrf.mxu0 }
 0x56e   : > { %v1256_v24 = vmul.f32 %v1254_v3, %v1254_v3 }
 0x56f   : > { %v1371_v40 = vpop.f32.mrf.mxu0 }
 0x570   : > { %v1257_v10 = vpack.c.bf16 %v1256_v24, %v1255_v42  ;;  %v1656_v56 = vmul.f32 -1.442695, %v1371_v40 }
 0x571   : > { %v1744_v46 = vpop.f32.mrf.mxu0 }
 0x572   : > { %1735 = vmatmul.mubr.msk.bf16.vlgmr.msra.gmra.mxu1 %vm527_vm1, %v1257_v10  ;;  %1830 = vpow2.f32 %v1656_v56 }
 0x573   : > { %v1374_v48 = vpop.f32.mrf.mxu0 }
 0x574   : > { %v1657_v18 = vmul.f32 -1.442695, %v1374_v48 }
 0x575   : > { %v1745_v49 = vpop.f32.mrf.mxu0 }
 0x576   : > { %1832 = vpow2.f32 %v1657_v18 }
 0x57f   : > { %v1831_v50 = vpop.eup %1830 }
 0x580   : > { %v1384_v6 = vadd.f32 1.0, %v1831_v50 }
 0x582   : > { %1834 = vrcp.f32 %v1384_v6 }
 0x583   : > { %v1833_v51 = vpop.eup %1832 }
 0x584   : > { %v1385_v36 = vadd.f32 1.0, %v1833_v51 }
 0x586   : > { %1836 = vrcp.f32 %v1385_v36 }
 0x58f   : > { %v1835_v52 = vpop.eup %1834 }
 0x593   : > { %v1837_v62 = vpop.eup %1836 }
 0x632   : > { %v1311_v19 = vpop.f32.mrf.mxu1 }
 0x633   : > { %v1390_v55 = vmul.f32 %v1835_v52, %v1311_v19 }
 0x634   : > { %v1736_v60 = vpop.f32.mrf.mxu1 }
 0x635   : > { %v1392_v8 = vadd.f32 %v1390_v55, %v2293_v34 }
 0x636   : > { %v1314_v13 = vpop.f32.mrf.mxu1 }
 0x637   : > { %1394 = vst.msk [vmem:[%s2014_s1] sm:$0xff] %vm527_vm1, %v1392_v8  ;;  %v1391_v33 = vmul.f32 %v1837_v62, %v1314_v13  ;;  %1399 = sbr.rel (%p1658_p8) target bundleno = 1912 (0x778), region = 64 }
 0x638   : > { %v1737_v11 = vpop.f32.mrf.mxu1 }
 0x639   : > { %v1393_v47 = vadd.f32 %v1391_v33, %v2290_v59 }
 0x63b   : > { %1395 = vst.msk [vmem:[%s2014_s1 + $0x8] sm:$0xff] %vm527_vm1, %v1393_v47 }
 0x63c   : > { %v1431_v16 = vrot.slane %v2069_v53, %v814_v22  ;;  %v1437_v25 = vrot.slane %v2069_v53, %v2096_v23 }
 0x63e   : > { %v1400_v61 = vld [vmem:[%s2014_s1] sm:$0xff] }
 0x63f   : > { %v1402_v17 = vsel %vm527_vm1, %v1400_v61, 0.0 }
 0x640   : > { %1403 = vadd.xlane.f32.xlu0 %v1402_v17 }
 0x642   : > { %v1401_v14 = vld [vmem:[%s2014_s1 + $0x8] sm:$0xff] }
 0x643   : > { %v1405_v34 = vsel %vm527_vm1, %v1401_v14, 0.0 }
 0x644   : > { %1406 = vadd.xlane.f32.xlu0 %v1405_v34 }
 0x6c9   : > { %v1404_v43 = vpop.xlane.xlu0 %1403 }
 0x6ca   : > { %v1408_v63 = vmul.f32 0.03125, %v1404_v43 }
 0x6cc   : > { %v1410_v26 = vsub.f32 %v1400_v61, %v1408_v63 }
 0x6cd   : > { %v1407_v44 = vpop.xlane.xlu0 %1406 }
 0x6ce   : > { %v1409_v59 = vmul.f32 0.03125, %v1407_v44  ;;  %v1412_v58 = vmul.f32 %v1410_v26, %v1410_v26 }
 0x6d0   : > { %v1411_v0 = vsub.f32 %v1401_v14, %v1409_v59  ;;  %v1414_v21 = vsel %vm527_vm1, %v1412_v58, 0.0 }
 0x6d1   : > { %1415 = vadd.xlane.f32.xlu1 %v1414_v21 }
 0x6d2   : > { %v1413_v30 = vmul.f32 %v1411_v0, %v1411_v0 }
 0x6d4   : > { %v1417_v1 = vsel %vm527_vm1, %v1413_v30, 0.0 }
 0x6d5   : > { %1418 = vadd.xlane.f32.xlu1 %v1417_v1 }
 0x75a   : > { %v1416_v9 = vpop.xlane.xlu1 %1415 }
 0x75b   : > { %v1420_v4 = vmul.f32 0.03125, %v1416_v9 }
 0x75d   : > { %v1422_v38 = vadd.f32 1e-05, %v1420_v4 }
 0x75e   : > { %v1419_v5 = vpop.xlane.xlu1 %1418 }
 0x75f   : > { %1838 = vrsqrt.f32 %v1422_v38  ;;  %v1421_v57 = vmul.f32 0.03125, %v1419_v5 }
 0x761   : > { %v1423_v7 = vadd.f32 1e-05, %v1421_v57 }
 0x763   : > { %1840 = vrsqrt.f32 %v1423_v7 }
 0x76c   : > { %v1839_v20 = vpop.eup %1838 }
 0x76d   : > { %v1426_v41 = vmul.f32 %v1839_v20, %v1410_v26 }
 0x76f   : > { %v1432_v12 = vmul.f32 %v1431_v16, %v1426_v41 }
 0x770   : > { %v1841_v27 = vpop.eup %1840 }
 0x771   : > { %v1438_v54 = vadd.f32 %v1437_v25, %v1432_v12  ;;  %v1427_v45 = vmul.f32 %v1841_v27, %v1411_v0 }
 0x773   : > { %1440 = vst.msk [vmem:[%s2014_s1] sm:$0xff] %vm527_vm1, %v1438_v54  ;;  %v1433_v29 = vmul.f32 %v1431_v16, %v1427_v45 }
 0x775   : > { %v1439_v32 = vadd.f32 %v1437_v25, %v1433_v29 }
 0x777   : > { %1441 = vst.msk [vmem:[%s2014_s1 + $0x8] sm:$0xff] %vm527_vm1, %v1439_v32 }
 0x778 PF: > { %s19_s13 = sadd.s32 1, %s1880_s13   ;;  %s2386_s0 = sld [smem:[#allocation6_spill]] }
 0x779   : > { %p16_p9 = scmp.ge.s32.totalorder %s19_s13, 6   ;;  %s2387_s30 = smov %s1872_s11 }
 0x77a   : > { %s2388_s10 = smov %s1876_s12  ;;  %s2389_s11 = smov %s2392_s14 }
 0x77b   :  { %18 = sbr.rel (!%p16_p9) target bundleno = 6 (0x6), region = 118 }
 0x77e   : > { %s2390_s12 = smov %s2386_s0 }

</bundles_post_ra>
